<compile_context>
chip_gen: v6e
topology: v6e:2x2x1
jax: 0.10.0
libtpu: 0.0.40
codegen_flags: <defaults>
</compile_context>

<pallas_src>
import functools

import jax
import jax.numpy as jnp
from jax.experimental import pallas as pl
from jax.experimental.pallas import tpu as pltpu


# ----------------------------- Pallas kernels ------------------------------

def _conv_head_kernel(a_ref, wc_ref, bc_ref, wh_ref, bh_ref, feat_ref, head_ref):
    """Fused per-level kernel: dense im2col conv matmul + bias + ReLU, then the
    27-wide (ins|cate|pcd) 1x1 head matmul on the freshly computed features.

    K fits in a single block -> no K grid axis, no accumulator scratch; the
    f32 MXU result is consumed directly and written back as bf16 features.
    """
    conv = jnp.dot(a_ref[...], wc_ref[...],
                   preferred_element_type=jnp.float32)              # (tm, Cout) f32
    feat = jnp.maximum(conv + bc_ref[...], 0.0)                     # bias + ReLU
    feat_ref[...] = feat.astype(feat_ref.dtype)                     # bf16 writeback
    head = jnp.dot(feat.astype(jnp.bfloat16), wh_ref[...],
                   preferred_element_type=jnp.float32) + bh_ref[...]
    head_ref[...] = head                                            # (tm, 27) f32


def conv3x3_s2_head(x, wc, bc, wh, bh):
    """3x3 stride-2 pad-1 conv (PyTorch semantics) + ReLU + fused 1x1 heads.

    x : (B, H, W, Cin) bf16 NHWC activations.
    wc: (9*Cin, Cout) bf16 dense im2col conv weight (packed once at init).
    bc: (1, Cout) f32.  wh: (Cout, Nh) bf16.  bh: (1, Nh) f32.
    Returns feats (B, Ho, Wo, Cout) bf16 and head logits (B, Ho, Wo, Nh) f32.
    """
    B, H, W, Cin = x.shape
    Ho, Wo = (H - 1) // 2 + 1, (W - 1) // 2 + 1
    Cout, Nh = wh.shape
    K = 9 * Cin

    # 9-tap gather: cheap strided slices of the (tiny) padded activation in
    # glue; the conv weight stays dense -> zero structural-zero MXU FLOPs.
    xp = jnp.pad(x, ((0, 0), (1, 1), (1, 1), (0, 0)))
    taps = [xp[:, kh:kh + 2 * Ho - 1:2, kw:kw + 2 * Wo - 1:2, :]
            for kh in range(3) for kw in range(3)]
    A = jnp.concatenate(taps, axis=-1).reshape(B * Ho * Wo, K)       # bf16

    M = B * Ho * Wo
    tm = 512 if (M > 512 and M % 512 == 0) else M                    # one block here

    feat, head = pl.pallas_call(
        _conv_head_kernel,
        out_shape=(jax.ShapeDtypeStruct((M, Cout), jnp.bfloat16),
                   jax.ShapeDtypeStruct((M, Nh), jnp.float32)),
        grid=(M // tm,),
        in_specs=[pl.BlockSpec((tm, K), lambda i: (i, 0)),
                  pl.BlockSpec((K, Cout), lambda i: (0, 0)),
                  pl.BlockSpec((1, Cout), lambda i: (0, 0)),
                  pl.BlockSpec((Cout, Nh), lambda i: (0, 0)),
                  pl.BlockSpec((1, Nh), lambda i: (0, 0))],
        out_specs=(pl.BlockSpec((tm, Cout), lambda i: (i, 0)),
                   pl.BlockSpec((tm, Nh), lambda i: (i, 0))),
        compiler_params=pltpu.CompilerParams(
            dimension_semantics=("parallel",)),
    )(A, wc, bc, wh, bh)
    return feat.reshape(B, Ho, Wo, Cout), head.reshape(B, Ho, Wo, Nh)


def _dice_mean_kernel(logit_ref, tgt_ref, o_ref):
    """Fused stable sigmoid + dice sums + dice finalize + mean (all levels)."""
    x = logit_ref[...]
    t = tgt_ref[...]
    # numerically-stable sigmoid: exp on EUP, divide via EUP approx reciprocal
    ex = jnp.exp(-jnp.abs(x))
    p = jnp.where(x >= 0.0, 1.0, ex) * pl.reciprocal(1.0 + ex, approx=True)
    pt = jnp.sum(p * t, axis=-1, keepdims=True)
    pp = jnp.sum(p * p, axis=-1, keepdims=True)
    tt = jnp.sum(t, axis=-1, keepdims=True)          # binary masks: t*t == t
    dice = 1.0 - 2.0 * pt * pl.reciprocal(pp + tt + 1e-6, approx=True)   # (M,1)
    mean = jnp.sum(dice, axis=0, keepdims=True) * (1.0 / dice.shape[0])
    o_ref[...] = jnp.broadcast_to(mean, o_ref.shape)


def pallas_dice_mean(logits, targets):
    M, L = logits.shape
    out = pl.pallas_call(
        _dice_mean_kernel,
        out_shape=jax.ShapeDtypeStruct((1, 128), jnp.float32),
        grid=(1,),
        in_specs=[pl.BlockSpec((M, L), lambda i: (0, 0)),
                  pl.BlockSpec((M, L), lambda i: (0, 0))],
        out_specs=pl.BlockSpec((1, 128), lambda i: (0, 0)),
    )(logits.astype(jnp.float32), targets.astype(jnp.float32))
    return out[0, 0]


# ------------------------------- parameters ---------------------------------

def init_params(key, cin=3, feat_ch=8, num_levels=3, num_grid=4, num_class=8):
    ks = jax.random.split(key, 16)
    p = {'backbone_w': [], 'backbone_b': []}
    c = cin
    for l in range(num_levels):
        p['backbone_w'].append(
            jax.random.normal(ks[l], (feat_ch, c, 3, 3), jnp.float32) * 0.1)
        p['backbone_b'].append(jnp.zeros((feat_ch,), jnp.float32))
        c = feat_ch
    p['ins_w'] = jax.random.normal(ks[8], (num_grid * num_grid, feat_ch, 1, 1),
                                   jnp.float32) * 0.1
    p['ins_b'] = jnp.zeros((num_grid * num_grid,), jnp.float32)
    p['cate_w'] = jax.random.normal(ks[9], (num_class, feat_ch, 1, 1),
                                    jnp.float32) * 0.1
    p['cate_b'] = jnp.zeros((num_class,), jnp.float32)
    p['pcd_w'] = jax.random.normal(ks[10], (3, feat_ch, 1, 1), jnp.float32) * 0.1
    p['pcd_b'] = jnp.zeros((3,), jnp.float32)
    return p


def pack_params(params, num_grid=4, num_class=8):
    """One-time weight packing (reshape + bf16 cast).  Done OUTSIDE the jitted
    step so no weight preprocessing is rebuilt per forward (per perf review)."""
    feat_ch = params['backbone_w'][0].shape[0]
    n_ins = num_grid * num_grid
    packed = {'conv_w': [], 'conv_b': []}
    for w, b in zip(params['backbone_w'], params['backbone_b']):
        # OIHW -> (kh, kw, ci, co) -> dense (9*Cin, Cout) im2col weight
        wk = jnp.transpose(w, (2, 3, 1, 0)).reshape(-1, w.shape[0])
        packed['conv_w'].append(wk.astype(jnp.bfloat16))
        packed['conv_b'].append(b.reshape(1, -1).astype(jnp.float32))
    w_heads = jnp.concatenate(
        [params['ins_w'].reshape(n_ins, feat_ch),
         params['cate_w'].reshape(num_class, feat_ch),
         params['pcd_w'].reshape(3, feat_ch)], axis=0).T          # (feat_ch, 27)
    b_heads = jnp.concatenate(
        [params['ins_b'], params['cate_b'], params['pcd_b']]).reshape(1, -1)
    packed['head_w'] = w_heads.astype(jnp.bfloat16)
    packed['head_b'] = b_heads.astype(jnp.float32)
    return packed


# ------------------------------- E3RFnet ------------------------------------

def feat_fuse(rgbd_feat, ins_pred):
    # mirrors E3RFnet.feat_fuse (not invoked by forward_loss in the reference)
    return rgbd_feat + ins_pred


def _forward_loss(packed, img, depth, pcd, masks, bboxes, labels, *,
                  num_grid, num_class):
    B, C, H, W = img.shape
    n_ins = num_grid * num_grid

    # extract_feat + bbox_head fused: synthetic 3-level stride-2 conv pyramid
    # (SOLOV1 backbone stand-in); ONE fused conv+heads Pallas call per level.
    x = img.transpose(0, 2, 3, 1).astype(jnp.bfloat16)        # NHWC, bf16 once
    ins_preds, cate_preds, pcd_preds, shapes = [], [], [], []
    for wc, bc in zip(packed['conv_w'], packed['conv_b']):
        x, head = conv3x3_s2_head(x, wc, bc, packed['head_w'], packed['head_b'])
        hb, wb = head.shape[1], head.shape[2]
        shapes.append((hb, wb))
        ins_preds.append(head[..., :n_ins])
        cate_preds.append(head[..., n_ins:n_ins + num_class])
        pcd_preds.append(head[..., n_ins + num_class:])

    # TODO(synk): the reference also builds img_feats (bilinear 32x32 concat)
    # and a nearest-resized depth, but neither feeds the returned loss, so they
    # are omitted here (they were dead code under jit) per the perf review.

    # TODO(synk): SOLOV1.bbox_head.loss is undefined in the reference; this is a
    # synthetic SOLO-style loss (per-level dice + BCE on categories + L2 on pcd).
    # bboxes are accepted but unused, matching no known definition.

    # --- dice loss: all levels packed into ONE fused Pallas reduction --------
    Lmax = max(hb * wb for hb, wb in shapes)
    Lp = -(-Lmax // 128) * 128
    dl, dt = [], []
    for (hb, wb), ins in zip(shapes, ins_preds):
        lg = ins.reshape(B, hb * wb, n_ins).transpose(0, 2, 1)
        lg = lg.reshape(B * n_ins, hb * wb)
        # nearest-like decimation of masks (synthetic stand-in for SOLO targets)
        tg = masks[:, :, ::H // hb, ::W // wb].reshape(B * n_ins, hb * wb)
        dl.append(jnp.pad(lg, ((0, 0), (0, Lp - hb * wb)),
                          constant_values=-30.0))      # sigmoid(pad) ~ 0
        dt.append(jnp.pad(tg, ((0, 0), (0, Lp - hb * wb))))
    ins_loss = pallas_dice_mean(jnp.concatenate(dl, axis=0),
                                jnp.concatenate(dt, axis=0))

    # --- category BCE (tiny pooled tensors, plain JAX glue) ------------------
    S = num_grid
    cate_tgt = jax.nn.one_hot(labels, num_class, dtype=jnp.float32)  # (B,S,S,nc)
    cls = []
    for (hb, wb), cp in zip(shapes, cate_preds):
        pooled = cp.reshape(B, S, hb // S, S, wb // S, num_class).mean(axis=(2, 4))
        prob = jax.nn.sigmoid(pooled)
        bce = -(cate_tgt * jnp.log(prob + 1e-6)
                + (1.0 - cate_tgt) * jnp.log(1.0 - prob + 1e-6))
        cls.append(jnp.mean(bce))
    cate_loss = jnp.mean(jnp.stack(cls))

    # --- pcd L2 ---------------------------------------------------------------
    pcd_mean = jnp.mean(pcd, axis=1)                                  # (B, 3)
    pls = [jnp.mean((jnp.mean(pp_, axis=(1, 2)) - pcd_mean) ** 2)
           for pp_ in pcd_preds]
    pcd_loss = jnp.mean(jnp.stack(pls))

    del bboxes
    return ins_loss + cate_loss + pcd_loss


def e3rf_forward(packed, img, depth, pcd=None, masks=None, bboxes=None,
                 labels=None, mode='train', num_grid=4, num_class=8):
    if mode in ('test', 'val'):
        # TODO(synk): reference forward_inference returns an undefined `pcd_preds`.
        raise NotImplementedError("forward_inference is undefined in the reference")
    return _forward_loss(packed, img, depth, pcd, masks, bboxes, labels,
                         num_grid=num_grid, num_class=num_class)


# --------------------------------- main --------------------------------------

if __name__ == "__main__":
    key = jax.random.PRNGKey(0)
    k_img, k_depth, k_pcd, k_mask, k_lab, k_param = jax.random.split(key, 6)

    B, C, H, W = 2, 3, 32, 32
    num_grid, num_class, feat_ch = 4, 8, 8

    img = jax.random.normal(k_img, (B, C, H, W), jnp.float32)
    depth = jax.random.uniform(k_depth, (B, 16, 16), jnp.float32)
    pcd = jax.random.normal(k_pcd, (B, 64, 3), jnp.float32)
    masks = (jax.random.uniform(k_mask, (B, num_grid * num_grid, H, W))
             > 0.5).astype(jnp.float32)
    labels = jax.random.randint(k_lab, (B, num_grid, num_grid), 0, num_class)
    bboxes = jnp.zeros((B, num_grid * num_grid, 4), jnp.float32)

    params = init_params(k_param, cin=C, feat_ch=feat_ch, num_levels=3,
                         num_grid=num_grid, num_class=num_class)
    packed = pack_params(params, num_grid=num_grid, num_class=num_class)

    forward = jax.jit(functools.partial(
        e3rf_forward, mode='train', num_grid=num_grid, num_class=num_class))
    loss = forward(packed, img, depth, pcd, masks, bboxes, labels)
    jax.block_until_ready(loss)
    assert loss.shape == () and jnp.isfinite(loss)
    print("KERNEL_OK")
</pallas_src>

<mosaic_0001>
module attributes {stable_mosaic.version = 11 : i64} {
  func.func @_conv_head_kernel(%arg0: i32, %arg1: memref<512x27xbf16, #tpu.memory_space<vmem>>, %arg2: memref<27x8xbf16, #tpu.memory_space<vmem>>, %arg3: memref<1x8xf32, #tpu.memory_space<vmem>>, %arg4: memref<8x27xbf16, #tpu.memory_space<vmem>>, %arg5: memref<1x27xf32, #tpu.memory_space<vmem>>, %arg6: memref<512x8xbf16, #tpu.memory_space<vmem>>, %arg7: memref<512x27xf32, #tpu.memory_space<vmem>>) attributes {dimension_semantics = [#tpu.dimension_semantics<parallel>], iteration_bounds = array<i64: 1>, scalar_prefetch = 0 : i64, scratch_operands = 0 : i64, tpu.core_type = #tpu.core_type<tc>, window_params = [{transform_indices = @transform_0, window_bounds = array<i64: 512, 27>}, {pipeline_mode = #tpu.pipeline_mode<synchronous>, transform_indices = @transform_1, window_bounds = array<i64: 27, 8>}, {pipeline_mode = #tpu.pipeline_mode<synchronous>, transform_indices = @transform_2, window_bounds = array<i64: 1, 8>}, {pipeline_mode = #tpu.pipeline_mode<synchronous>, transform_indices = @transform_3, window_bounds = array<i64: 8, 27>}, {pipeline_mode = #tpu.pipeline_mode<synchronous>, transform_indices = @transform_4, window_bounds = array<i64: 1, 27>}, {transform_indices = @transform_5, window_bounds = array<i64: 512, 8>}, {transform_indices = @transform_6, window_bounds = array<i64: 512, 27>}]} {
    %c0 = arith.constant 0 : index
    %c0_0 = arith.constant 0 : index
    %0 = vector.load %arg1[%c0, %c0_0] : memref<512x27xbf16, #tpu.memory_space<vmem>>, vector<512x27xbf16>
    %c0_1 = arith.constant 0 : index
    %c0_2 = arith.constant 0 : index
    %1 = vector.load %arg2[%c0_1, %c0_2] : memref<27x8xbf16, #tpu.memory_space<vmem>>, vector<27x8xbf16>
    %cst = arith.constant dense<0.000000e+00> : vector<512x8xf32>
    %2 = tpu.matmul %0, %1, %cst {dimension_numbers = #tpu.dot_dimension_numbers<[1], [0], [0], [1], [0, 0, 1, 1], [], []>} : vector<512x27xbf16>, vector<27x8xbf16>, vector<512x8xf32> -> vector<512x8xf32>
    %c0_3 = arith.constant 0 : index
    %c0_4 = arith.constant 0 : index
    %3 = vector.load %arg3[%c0_3, %c0_4] : memref<1x8xf32, #tpu.memory_space<vmem>>, vector<1x8xf32>
    %4 = vector.broadcast %3 : vector<1x8xf32> to vector<512x8xf32>
    %5 = arith.addf %2, %4 : vector<512x8xf32>
    %cst_5 = arith.constant 0.000000e+00 : f32
    %6 = vector.broadcast %cst_5 : f32 to vector<512x8xf32>
    %7 = arith.maximumf %5, %6 : vector<512x8xf32>
    %8 = arith.truncf %7 : vector<512x8xf32> to vector<512x8xbf16>
    %c0_6 = arith.constant 0 : index
    %c0_7 = arith.constant 0 : index
    %9 = vector.load %arg6[%c0_6, %c0_7] : memref<512x8xbf16, #tpu.memory_space<vmem>>, vector<512x8xbf16>
    tpu.vector_store %arg6[%c0_6, %c0_7], %8 {strides = array<i32>} : memref<512x8xbf16, #tpu.memory_space<vmem>>, vector<512x8xbf16>,
    %10 = arith.truncf %7 : vector<512x8xf32> to vector<512x8xbf16>
    %c0_8 = arith.constant 0 : index
    %c0_9 = arith.constant 0 : index
    %11 = vector.load %arg4[%c0_8, %c0_9] : memref<8x27xbf16, #tpu.memory_space<vmem>>, vector<8x27xbf16>
    %cst_10 = arith.constant dense<0.000000e+00> : vector<512x27xf32>
    %12 = tpu.matmul %10, %11, %cst_10 {dimension_numbers = #tpu.dot_dimension_numbers<[1], [0], [0], [1], [0, 0, 1, 1], [], []>} : vector<512x8xbf16>, vector<8x27xbf16>, vector<512x27xf32> -> vector<512x27xf32>
    %c0_11 = arith.constant 0 : index
    %c0_12 = arith.constant 0 : index
    %13 = vector.load %arg5[%c0_11, %c0_12] : memref<1x27xf32, #tpu.memory_space<vmem>>, vector<1x27xf32>
    %14 = vector.broadcast %13 : vector<1x27xf32> to vector<512x27xf32>
    %15 = arith.addf %12, %14 : vector<512x27xf32>
    %c0_13 = arith.constant 0 : index
    %c0_14 = arith.constant 0 : index
    %16 = vector.load %arg7[%c0_13, %c0_14] : memref<512x27xf32, #tpu.memory_space<vmem>>, vector<512x27xf32>
    tpu.vector_store %arg7[%c0_13, %c0_14], %15 {strides = array<i32>} : memref<512x27xf32, #tpu.memory_space<vmem>>, vector<512x27xf32>,
    return
  }
  func.func @transform_0(%arg0: i32) -> (i32, i32) {
    %c0_i32 = arith.constant 0 : i32
    %c0_i32_0 = arith.constant 0 : i32
    return %arg0, %c0_i32 : i32, i32
  }
  func.func @transform_1(%arg0: i32) -> (i32, i32) {
    %c0_i32 = arith.constant 0 : i32
    %c0_i32_0 = arith.constant 0 : i32
    %c0_i32_1 = arith.constant 0 : i32
    return %c0_i32, %c0_i32_0 : i32, i32
  }
  func.func @transform_2(%arg0: i32) -> (i32, i32) {
    %c0_i32 = arith.constant 0 : i32
    %c0_i32_0 = arith.constant 0 : i32
    %c0_i32_1 = arith.constant 0 : i32
    return %c0_i32, %c0_i32_0 : i32, i32
  }
  func.func @transform_3(%arg0: i32) -> (i32, i32) {
    %c0_i32 = arith.constant 0 : i32
    %c0_i32_0 = arith.constant 0 : i32
    %c0_i32_1 = arith.constant 0 : i32
    return %c0_i32, %c0_i32_0 : i32, i32
  }
  func.func @transform_4(%arg0: i32) -> (i32, i32) {
    %c0_i32 = arith.constant 0 : i32
    %c0_i32_0 = arith.constant 0 : i32
    %c0_i32_1 = arith.constant 0 : i32
    return %c0_i32, %c0_i32_0 : i32, i32
  }
  func.func @transform_5(%arg0: i32) -> (i32, i32) {
    %c0_i32 = arith.constant 0 : i32
    %c0_i32_0 = arith.constant 0 : i32
    return %arg0, %c0_i32 : i32, i32
  }
  func.func @transform_6(%arg0: i32) -> (i32, i32) {
    %c0_i32 = arith.constant 0 : i32
    %c0_i32_0 = arith.constant 0 : i32
    return %arg0, %c0_i32 : i32, i32
  }
}

module attributes {stable_mosaic.version = 11 : i64} {
  func.func @_conv_head_kernel(%arg0: i32, %arg1: memref<128x72xbf16, #tpu.memory_space<vmem>>, %arg2: memref<72x8xbf16, #tpu.memory_space<vmem>>, %arg3: memref<1x8xf32, #tpu.memory_space<vmem>>, %arg4: memref<8x27xbf16, #tpu.memory_space<vmem>>, %arg5: memref<1x27xf32, #tpu.memory_space<vmem>>, %arg6: memref<128x8xbf16, #tpu.memory_space<vmem>>, %arg7: memref<128x27xf32, #tpu.memory_space<vmem>>) attributes {dimension_semantics = [#tpu.dimension_semantics<parallel>], iteration_bounds = array<i64: 1>, scalar_prefetch = 0 : i64, scratch_operands = 0 : i64, tpu.core_type = #tpu.core_type<tc>, window_params = [{transform_indices = @transform_0, window_bounds = array<i64: 128, 72>}, {pipeline_mode = #tpu.pipeline_mode<synchronous>, transform_indices = @transform_1, window_bounds = array<i64: 72, 8>}, {pipeline_mode = #tpu.pipeline_mode<synchronous>, transform_indices = @transform_2, window_bounds = array<i64: 1, 8>}, {pipeline_mode = #tpu.pipeline_mode<synchronous>, transform_indices = @transform_3, window_bounds = array<i64: 8, 27>}, {pipeline_mode = #tpu.pipeline_mode<synchronous>, transform_indices = @transform_4, window_bounds = array<i64: 1, 27>}, {transform_indices = @transform_5, window_bounds = array<i64: 128, 8>}, {transform_indices = @transform_6, window_bounds = array<i64: 128, 27>}]} {
    %c0 = arith.constant 0 : index
    %c0_0 = arith.constant 0 : index
    %0 = vector.load %arg1[%c0, %c0_0] : memref<128x72xbf16, #tpu.memory_space<vmem>>, vector<128x72xbf16>
    %c0_1 = arith.constant 0 : index
    %c0_2 = arith.constant 0 : index
    %1 = vector.load %arg2[%c0_1, %c0_2] : memref<72x8xbf16, #tpu.memory_space<vmem>>, vector<72x8xbf16>
    %cst = arith.constant dense<0.000000e+00> : vector<128x8xf32>
    %2 = tpu.matmul %0, %1, %cst {dimension_numbers = #tpu.dot_dimension_numbers<[1], [0], [0], [1], [0, 0, 1, 1], [], []>} : vector<128x72xbf16>, vector<72x8xbf16>, vector<128x8xf32> -> vector<128x8xf32>
    %c0_3 = arith.constant 0 : index
    %c0_4 = arith.constant 0 : index
    %3 = vector.load %arg3[%c0_3, %c0_4] : memref<1x8xf32, #tpu.memory_space<vmem>>, vector<1x8xf32>
    %4 = vector.broadcast %3 : vector<1x8xf32> to vector<128x8xf32>
    %5 = arith.addf %2, %4 : vector<128x8xf32>
    %cst_5 = arith.constant 0.000000e+00 : f32
    %6 = vector.broadcast %cst_5 : f32 to vector<128x8xf32>
    %7 = arith.maximumf %5, %6 : vector<128x8xf32>
    %8 = arith.truncf %7 : vector<128x8xf32> to vector<128x8xbf16>
    %c0_6 = arith.constant 0 : index
    %c0_7 = arith.constant 0 : index
    %9 = vector.load %arg6[%c0_6, %c0_7] : memref<128x8xbf16, #tpu.memory_space<vmem>>, vector<128x8xbf16>
    tpu.vector_store %arg6[%c0_6, %c0_7], %8 {strides = array<i32>} : memref<128x8xbf16, #tpu.memory_space<vmem>>, vector<128x8xbf16>,
    %10 = arith.truncf %7 : vector<128x8xf32> to vector<128x8xbf16>
    %c0_8 = arith.constant 0 : index
    %c0_9 = arith.constant 0 : index
    %11 = vector.load %arg4[%c0_8, %c0_9] : memref<8x27xbf16, #tpu.memory_space<vmem>>, vector<8x27xbf16>
    %cst_10 = arith.constant dense<0.000000e+00> : vector<128x27xf32>
    %12 = tpu.matmul %10, %11, %cst_10 {dimension_numbers = #tpu.dot_dimension_numbers<[1], [0], [0], [1], [0, 0, 1, 1], [], []>} : vector<128x8xbf16>, vector<8x27xbf16>, vector<128x27xf32> -> vector<128x27xf32>
    %c0_11 = arith.constant 0 : index
    %c0_12 = arith.constant 0 : index
    %13 = vector.load %arg5[%c0_11, %c0_12] : memref<1x27xf32, #tpu.memory_space<vmem>>, vector<1x27xf32>
    %14 = vector.broadcast %13 : vector<1x27xf32> to vector<128x27xf32>
    %15 = arith.addf %12, %14 : vector<128x27xf32>
    %c0_13 = arith.constant 0 : index
    %c0_14 = arith.constant 0 : index
    %16 = vector.load %arg7[%c0_13, %c0_14] : memref<128x27xf32, #tpu.memory_space<vmem>>, vector<128x27xf32>
    tpu.vector_store %arg7[%c0_13, %c0_14], %15 {strides = array<i32>} : memref<128x27xf32, #tpu.memory_space<vmem>>, vector<128x27xf32>,
    return
  }
  func.func @transform_0(%arg0: i32) -> (i32, i32) {
    %c0_i32 = arith.constant 0 : i32
    %c0_i32_0 = arith.constant 0 : i32
    return %arg0, %c0_i32 : i32, i32
  }
  func.func @transform_1(%arg0: i32) -> (i32, i32) {
    %c0_i32 = arith.constant 0 : i32
    %c0_i32_0 = arith.constant 0 : i32
    %c0_i32_1 = arith.constant 0 : i32
    return %c0_i32, %c0_i32_0 : i32, i32
  }
  func.func @transform_2(%arg0: i32) -> (i32, i32) {
    %c0_i32 = arith.constant 0 : i32
    %c0_i32_0 = arith.constant 0 : i32
    %c0_i32_1 = arith.constant 0 : i32
    return %c0_i32, %c0_i32_0 : i32, i32
  }
  func.func @transform_3(%arg0: i32) -> (i32, i32) {
    %c0_i32 = arith.constant 0 : i32
    %c0_i32_0 = arith.constant 0 : i32
    %c0_i32_1 = arith.constant 0 : i32
    return %c0_i32, %c0_i32_0 : i32, i32
  }
  func.func @transform_4(%arg0: i32) -> (i32, i32) {
    %c0_i32 = arith.constant 0 : i32
    %c0_i32_0 = arith.constant 0 : i32
    %c0_i32_1 = arith.constant 0 : i32
    return %c0_i32, %c0_i32_0 : i32, i32
  }
  func.func @transform_5(%arg0: i32) -> (i32, i32) {
    %c0_i32 = arith.constant 0 : i32
    %c0_i32_0 = arith.constant 0 : i32
    return %arg0, %c0_i32 : i32, i32
  }
  func.func @transform_6(%arg0: i32) -> (i32, i32) {
    %c0_i32 = arith.constant 0 : i32
    %c0_i32_0 = arith.constant 0 : i32
    return %arg0, %c0_i32 : i32, i32
  }
}

module attributes {stable_mosaic.version = 11 : i64} {
  func.func @_conv_head_kernel(%arg0: i32, %arg1: memref<32x72xbf16, #tpu.memory_space<vmem>>, %arg2: memref<72x8xbf16, #tpu.memory_space<vmem>>, %arg3: memref<1x8xf32, #tpu.memory_space<vmem>>, %arg4: memref<8x27xbf16, #tpu.memory_space<vmem>>, %arg5: memref<1x27xf32, #tpu.memory_space<vmem>>, %arg6: memref<32x8xbf16, #tpu.memory_space<vmem>>, %arg7: memref<32x27xf32, #tpu.memory_space<vmem>>) attributes {dimension_semantics = [#tpu.dimension_semantics<parallel>], iteration_bounds = array<i64: 1>, scalar_prefetch = 0 : i64, scratch_operands = 0 : i64, tpu.core_type = #tpu.core_type<tc>, window_params = [{transform_indices = @transform_0, window_bounds = array<i64: 32, 72>}, {pipeline_mode = #tpu.pipeline_mode<synchronous>, transform_indices = @transform_1, window_bounds = array<i64: 72, 8>}, {pipeline_mode = #tpu.pipeline_mode<synchronous>, transform_indices = @transform_2, window_bounds = array<i64: 1, 8>}, {pipeline_mode = #tpu.pipeline_mode<synchronous>, transform_indices = @transform_3, window_bounds = array<i64: 8, 27>}, {pipeline_mode = #tpu.pipeline_mode<synchronous>, transform_indices = @transform_4, window_bounds = array<i64: 1, 27>}, {transform_indices = @transform_5, window_bounds = array<i64: 32, 8>}, {transform_indices = @transform_6, window_bounds = array<i64: 32, 27>}]} {
    %c0 = arith.constant 0 : index
    %c0_0 = arith.constant 0 : index
    %0 = vector.load %arg1[%c0, %c0_0] : memref<32x72xbf16, #tpu.memory_space<vmem>>, vector<32x72xbf16>
    %c0_1 = arith.constant 0 : index
    %c0_2 = arith.constant 0 : index
    %1 = vector.load %arg2[%c0_1, %c0_2] : memref<72x8xbf16, #tpu.memory_space<vmem>>, vector<72x8xbf16>
    %cst = arith.constant dense<0.000000e+00> : vector<32x8xf32>
    %2 = tpu.matmul %0, %1, %cst {dimension_numbers = #tpu.dot_dimension_numbers<[1], [0], [0], [1], [0, 0, 1, 1], [], []>} : vector<32x72xbf16>, vector<72x8xbf16>, vector<32x8xf32> -> vector<32x8xf32>
    %c0_3 = arith.constant 0 : index
    %c0_4 = arith.constant 0 : index
    %3 = vector.load %arg3[%c0_3, %c0_4] : memref<1x8xf32, #tpu.memory_space<vmem>>, vector<1x8xf32>
    %4 = vector.broadcast %3 : vector<1x8xf32> to vector<32x8xf32>
    %5 = arith.addf %2, %4 : vector<32x8xf32>
    %cst_5 = arith.constant 0.000000e+00 : f32
    %6 = vector.broadcast %cst_5 : f32 to vector<32x8xf32>
    %7 = arith.maximumf %5, %6 : vector<32x8xf32>
    %8 = arith.truncf %7 : vector<32x8xf32> to vector<32x8xbf16>
    %c0_6 = arith.constant 0 : index
    %c0_7 = arith.constant 0 : index
    %9 = vector.load %arg6[%c0_6, %c0_7] : memref<32x8xbf16, #tpu.memory_space<vmem>>, vector<32x8xbf16>
    tpu.vector_store %arg6[%c0_6, %c0_7], %8 {strides = array<i32>} : memref<32x8xbf16, #tpu.memory_space<vmem>>, vector<32x8xbf16>,
    %10 = arith.truncf %7 : vector<32x8xf32> to vector<32x8xbf16>
    %c0_8 = arith.constant 0 : index
    %c0_9 = arith.constant 0 : index
    %11 = vector.load %arg4[%c0_8, %c0_9] : memref<8x27xbf16, #tpu.memory_space<vmem>>, vector<8x27xbf16>
    %cst_10 = arith.constant dense<0.000000e+00> : vector<32x27xf32>
    %12 = tpu.matmul %10, %11, %cst_10 {dimension_numbers = #tpu.dot_dimension_numbers<[1], [0], [0], [1], [0, 0, 1, 1], [], []>} : vector<32x8xbf16>, vector<8x27xbf16>, vector<32x27xf32> -> vector<32x27xf32>
    %c0_11 = arith.constant 0 : index
    %c0_12 = arith.constant 0 : index
    %13 = vector.load %arg5[%c0_11, %c0_12] : memref<1x27xf32, #tpu.memory_space<vmem>>, vector<1x27xf32>
    %14 = vector.broadcast %13 : vector<1x27xf32> to vector<32x27xf32>
    %15 = arith.addf %12, %14 : vector<32x27xf32>
    %c0_13 = arith.constant 0 : index
    %c0_14 = arith.constant 0 : index
    %16 = vector.load %arg7[%c0_13, %c0_14] : memref<32x27xf32, #tpu.memory_space<vmem>>, vector<32x27xf32>
    tpu.vector_store %arg7[%c0_13, %c0_14], %15 {strides = array<i32>} : memref<32x27xf32, #tpu.memory_space<vmem>>, vector<32x27xf32>,
    return
  }
  func.func @transform_0(%arg0: i32) -> (i32, i32) {
    %c0_i32 = arith.constant 0 : i32
    %c0_i32_0 = arith.constant 0 : i32
    return %arg0, %c0_i32 : i32, i32
  }
  func.func @transform_1(%arg0: i32) -> (i32, i32) {
    %c0_i32 = arith.constant 0 : i32
    %c0_i32_0 = arith.constant 0 : i32
    %c0_i32_1 = arith.constant 0 : i32
    return %c0_i32, %c0_i32_0 : i32, i32
  }
  func.func @transform_2(%arg0: i32) -> (i32, i32) {
    %c0_i32 = arith.constant 0 : i32
    %c0_i32_0 = arith.constant 0 : i32
    %c0_i32_1 = arith.constant 0 : i32
    return %c0_i32, %c0_i32_0 : i32, i32
  }
  func.func @transform_3(%arg0: i32) -> (i32, i32) {
    %c0_i32 = arith.constant 0 : i32
    %c0_i32_0 = arith.constant 0 : i32
    %c0_i32_1 = arith.constant 0 : i32
    return %c0_i32, %c0_i32_0 : i32, i32
  }
  func.func @transform_4(%arg0: i32) -> (i32, i32) {
    %c0_i32 = arith.constant 0 : i32
    %c0_i32_0 = arith.constant 0 : i32
    %c0_i32_1 = arith.constant 0 : i32
    return %c0_i32, %c0_i32_0 : i32, i32
  }
  func.func @transform_5(%arg0: i32) -> (i32, i32) {
    %c0_i32 = arith.constant 0 : i32
    %c0_i32_0 = arith.constant 0 : i32
    return %arg0, %c0_i32 : i32, i32
  }
  func.func @transform_6(%arg0: i32) -> (i32, i32) {
    %c0_i32 = arith.constant 0 : i32
    %c0_i32_0 = arith.constant 0 : i32
    return %arg0, %c0_i32 : i32, i32
  }
}

module attributes {stable_mosaic.version = 11 : i64} {
  func.func @_dice_mean_kernel(%arg0: i32, %arg1: memref<96x256xf32, #tpu.memory_space<vmem>>, %arg2: memref<96x256xf32, #tpu.memory_space<vmem>>, %arg3: memref<1x128xf32, #tpu.memory_space<vmem>>) attributes {dimension_semantics = [#tpu.dimension_semantics<arbitrary>], iteration_bounds = array<i64: 1>, scalar_prefetch = 0 : i64, scratch_operands = 0 : i64, tpu.core_type = #tpu.core_type<tc>, window_params = [{pipeline_mode = #tpu.pipeline_mode<synchronous>, transform_indices = @transform_0, window_bounds = array<i64: 96, 256>}, {pipeline_mode = #tpu.pipeline_mode<synchronous>, transform_indices = @transform_1, window_bounds = array<i64: 96, 256>}, {pipeline_mode = #tpu.pipeline_mode<synchronous>, transform_indices = @transform_2, window_bounds = array<i64: 1, 128>}]} {
    %c0 = arith.constant 0 : index
    %c0_0 = arith.constant 0 : index
    %0 = vector.load %arg1[%c0, %c0_0] : memref<96x256xf32, #tpu.memory_space<vmem>>, vector<96x256xf32>
    %c0_1 = arith.constant 0 : index
    %c0_2 = arith.constant 0 : index
    %1 = vector.load %arg2[%c0_1, %c0_2] : memref<96x256xf32, #tpu.memory_space<vmem>>, vector<96x256xf32>
    %2 = math.absf %0 : vector<96x256xf32>
    %cst = arith.constant 0.000000e+00 : f32
    %3 = vector.broadcast %cst : f32 to vector<96x256xf32>
    %4 = arith.subf %3, %2 : vector<96x256xf32>
    %5 = math.exp %4 : vector<96x256xf32>
    %cst_3 = arith.constant 0.000000e+00 : f32
    %6 = vector.broadcast %cst_3 : f32 to vector<96x256xf32>
    %7 = arith.cmpf oge, %0, %6 : vector<96x256xf32>
    %cst_4 = arith.constant 1.000000e+00 : f32
    %8 = vector.broadcast %cst_4 : f32 to vector<96x256xf32>
    %9 = arith.select %7, %8, %5 : vector<96x256xi1>, vector<96x256xf32>
    %cst_5 = arith.constant 1.000000e+00 : f32
    %10 = vector.broadcast %cst_5 : f32 to vector<96x256xf32>
    %11 = arith.addf %10, %5 : vector<96x256xf32>
    %12 = tpu.reciprocal %11 {approx = true} : vector<96x256xf32> -> vector<96x256xf32>
    %13 = arith.mulf %9, %12 : vector<96x256xf32>
    %14 = arith.mulf %13, %1 : vector<96x256xf32>
    %cst_6 = arith.constant dense<0.000000e+00> : vector<96xf32>
    %15 = vector.multi_reduction <add>, %14, %cst_6 [1] : vector<96x256xf32> to vector<96xf32>
    %16 = vector.shape_cast %15 : vector<96xf32> to vector<96x1xf32>
    %17 = arith.mulf %13, %13 : vector<96x256xf32>
    %cst_7 = arith.constant dense<0.000000e+00> : vector<96xf32>
    %18 = vector.multi_reduction <add>, %17, %cst_7 [1] : vector<96x256xf32> to vector<96xf32>
    %19 = vector.shape_cast %18 : vector<96xf32> to vector<96x1xf32>
    %cst_8 = arith.constant dense<0.000000e+00> : vector<96xf32>
    %20 = vector.multi_reduction <add>, %1, %cst_8 [1] : vector<96x256xf32> to vector<96xf32>
    %21 = vector.shape_cast %20 : vector<96xf32> to vector<96x1xf32>
    %cst_9 = arith.constant 2.000000e+00 : f32
    %22 = vector.broadcast %cst_9 : f32 to vector<96x1xf32>
    %23 = arith.mulf %22, %16 : vector<96x1xf32>
    %24 = arith.addf %19, %21 : vector<96x1xf32>
    %cst_10 = arith.constant 9.99999997E-7 : f32
    %25 = vector.broadcast %cst_10 : f32 to vector<96x1xf32>
    %26 = arith.addf %24, %25 : vector<96x1xf32>
    %27 = tpu.reciprocal %26 {approx = true} : vector<96x1xf32> -> vector<96x1xf32>
    %28 = arith.mulf %23, %27 : vector<96x1xf32>
    %cst_11 = arith.constant 1.000000e+00 : f32
    %29 = vector.broadcast %cst_11 : f32 to vector<96x1xf32>
    %30 = arith.subf %29, %28 : vector<96x1xf32>
    %cst_12 = arith.constant dense<0.000000e+00> : vector<1xf32>
    %31 = vector.multi_reduction <add>, %30, %cst_12 [0] : vector<96x1xf32> to vector<1xf32>
    %32 = vector.shape_cast %31 : vector<1xf32> to vector<1x1xf32>
    %cst_13 = arith.constant 0.010416667 : f32
    %33 = vector.broadcast %cst_13 : f32 to vector<1x1xf32>
    %34 = arith.mulf %32, %33 : vector<1x1xf32>
    %35 = vector.shape_cast %34 : vector<1x1xf32> to vector<1x1xf32>
    %36 = vector.broadcast %35 : vector<1x1xf32> to vector<1x128xf32>
    %c0_14 = arith.constant 0 : index
    %c0_15 = arith.constant 0 : index
    %37 = vector.load %arg3[%c0_14, %c0_15] : memref<1x128xf32, #tpu.memory_space<vmem>>, vector<1x128xf32>
    tpu.vector_store %arg3[%c0_14, %c0_15], %36 {strides = array<i32>} : memref<1x128xf32, #tpu.memory_space<vmem>>, vector<1x128xf32>,
    return
  }
  func.func @transform_0(%arg0: i32) -> (i32, i32) {
    %c0_i32 = arith.constant 0 : i32
    %c0_i32_0 = arith.constant 0 : i32
    %c0_i32_1 = arith.constant 0 : i32
    return %c0_i32, %c0_i32_0 : i32, i32
  }
  func.func @transform_1(%arg0: i32) -> (i32, i32) {
    %c0_i32 = arith.constant 0 : i32
    %c0_i32_0 = arith.constant 0 : i32
    %c0_i32_1 = arith.constant 0 : i32
    return %c0_i32, %c0_i32_0 : i32, i32
  }
  func.func @transform_2(%arg0: i32) -> (i32, i32) {
    %c0_i32 = arith.constant 0 : i32
    %c0_i32_0 = arith.constant 0 : i32
    %c0_i32_1 = arith.constant 0 : i32
    return %c0_i32, %c0_i32_0 : i32, i32
  }
}

</mosaic_0001>

<bundles_post_ra>
// kernel: e3rf_forward.5
= control target key start
LH: loop header
LB: loop body
LE: loop exit
PB: predicated region body
PF: predicated region fallthrough
CT: control target
= control target key end

     0   :  { %vm147_vm0 = vcmask 1043456   ;;  %vm122_vm1 = vcmask 588800   ;;  %vm328_vm2 = vcmask 60416   ;;  %vm353_vm3 = vcmask 64512   ;;  %s896_s1 = inlined_call_operand.vmem [shape: bf16[72,8], index: 1, kind: input, shape index: {}]   ;;  %s897_s0 = inlined_call_operand.vmem [shape: bf16[128,72], index: 0, kind: input, shape index: {}]   ;;  %s898_s3 = inlined_call_operand.vmem [shape: bf16[8,27], index: 3, kind: input, shape index: {}]   ;;  %s899_s2 = inlined_call_operand.vmem [shape: f32[1,8], index: 2, kind: input, shape index: {}]   ;;  %s900_s5 = inlined_call_operand.vmem [shape: bf16[128,8], index: 5, kind: output, shape index: {0}]   ;;  %s901_s4 = inlined_call_operand.vmem [shape: f32[1,27], index: 4, kind: input, shape index: {}]   ;;  %s902_s6 = inlined_call_operand.vmem [shape: f32[128,27], index: 6, kind: output, shape index: {1}]  }
   0x1   :  { %v634_v0 = vld [vmem:[%s896_s1 + $0x20] ss:$0 sps:$4 sm:$0xff]   ;;  %v635_v1 = vld [vmem:[%s896_s1 + $0x18] sm:$0xff]   ;;  %v636_v3 = vld [vmem:[%s896_s1 + $0x10] sm:$0xff]   ;;  %vm478_vm4 = vcmask 220160  }
   0x2   :  { %632 = vmatprep.subr.msk.bf16.mxu0 %vm147_vm0, %v634_v0  ;;  %v149_v2 = vsel %vm147_vm0, %v634_v0, 0  ;;  %v639_v4 = vld [vmem:[%s897_s0] sm:$0xff]   ;;  %v637_v5 = vld [vmem:[%s896_s1 + $0x8] sm:$0xff]   ;;  %v641_v8 = vld [vmem:[%s897_s0 + $0x10] sm:$0xff]  }
   0x3   :  { %589 = vmatpush3.bf16.msra.mxu0 %v149_v2  ;;  %598 = vmatprep.mubr.msk.bf16.mxu0 %vm122_vm1, %v639_v4  ;;  %v638_v6 = vld [vmem:[%s896_s1] sm:$0xff]   ;;  %v640_v7 = vld [vmem:[%s897_s0 + $0x8] sm:$0xff]   ;;  %v642_v9 = vld [vmem:[%s897_s0 + $0x18] sm:$0xff]  }
   0x4   :  { %590 = vmatprep.subr.bf16.mxu0 %v635_v1  ;;  %v643_v10 = vld [vmem:[%s897_s0 + $0x20] sm:$0xff]   ;;  %v644_v11 = vld [vmem:[%s897_s0 + $0x28] sm:$0xff]   ;;  %v645_v12 = vld [vmem:[%s897_s0 + $0x30] sm:$0xff]  }
   0x5   :  { %v646_v13 = vld [vmem:[%s897_s0 + $0x38] sm:$0xff]   ;;  %v345_v14 = vld [vmem:[%s898_s3] sm:$0xf] }
   0x6   :  { %633 = vmatprep.subr.msk.bf16.mxu1 %vm147_vm0, %v345_v14  ;;  %v379_v15 = vsel %vm147_vm0, %v345_v14, 0  ;;  %v739_v16 = vld [vmem:[%s899_s2] ss:$0 sm:$0xff] }
   0x7   :  { %591 = vmatpush3.bf16.msra.mxu0 %v635_v1  ;;  %615 = vmatpush3.bf16.msra.mxu1 %v379_v15 }
   0x8   :  { %592 = vmatprep.subr.bf16.mxu0 %v636_v3 }
   0xb   :  { %593 = vmatpush3.bf16.msra.mxu0 %v636_v3 }
   0xc   :  { %594 = vmatprep.subr.bf16.mxu0 %v637_v5 }
   0xf   :  { %595 = vmatpush3.bf16.msra.mxu0 %v637_v5 }
  0x10   :  { %596 = vmatprep.subr.bf16.mxu0 %v638_v6 }
  0x13   :  { %597 = vmatpush3.bf16.msra.mxu0 %v638_v6 }
  0x16   :  { %599 = vmatmul.mubr.msk.bf16.vlgmr.msra.gmra.mxu0 %vm122_vm1, %v640_v7 }
  0x17   :  { %602 = vmatprep.mubr.msk.bf16.mxu0 %vm122_vm1, %v641_v8 }
  0x1e   :  { %603 = vmatmul.mubr.msk.bf16.gmra.mxu0 %vm122_vm1, %v642_v9 }
  0x1f   :  { %606 = vmatprep.mubr.msk.bf16.mxu0 %vm122_vm1, %v643_v10 }
  0x26   :  { %607 = vmatmul.mubr.msk.bf16.gmra.mxu0 %vm122_vm1, %v644_v11 }
  0x27   :  { %610 = vmatprep.mubr.msk.bf16.mxu0 %vm122_vm1, %v645_v12 }
  0x2e   :  { %611 = vmatmul.mubr.msk.bf16.gmra.mxu0 %vm122_vm1, %v646_v13 }
  0xd6   :  { %v600_v17 = vpop.f32.mrf.mxu0 }
  0xd7   :  { %v194_v18 = vadd.f32 %v600_v17, %v739_v16 }
  0xd8   :  { %v185_v19 = vpop.f32.mrf.mxu0 }
  0xd9   :  { %v250_v20 = vmax.f32 %v194_v18, 0.0  ;;  %v186_v21 = vadd.f32 %v739_v16, %v185_v19 }
  0xda   :  { %v601_v22 = vpop.f32.mrf.mxu0 }
  0xdb   :  { %v552_v23 = vpack.c.bf16 %v250_v20, %v250_v20  ;;  %v248_v24 = vmax.f32 %v186_v21, 0.0  ;;  %v197_v25 = vadd.f32 %v601_v22, %v739_v16 }
  0xdc   :  { %v188_v26 = vpop.f32.mrf.mxu0 }
  0xdd   :  { %331 = vst.msk [vmem:[%s900_s5 + $0x8] sm:$0xf] %vm328_vm2, %v552_v23  ;;  %v550_v27 = vpack.c.bf16 %v248_v24, %v248_v24  ;;  %v251_v28 = vmax.f32 %v197_v25, 0.0  ;;  %v189_v29 = vadd.f32 %v739_v16, %v188_v26 }
  0xde   :  { %v604_v30 = vpop.f32.mrf.mxu0 }
  0xdf   :  { %329 = vst.msk [vmem:[%s900_s5] sm:$0xf] %vm328_vm2, %v550_v27  ;;  %v553_v31 = vpack.c.bf16 %v251_v28, %v251_v28  ;;  %v249_v32 = vmax.f32 %v189_v29, 0.0  ;;  %v210_v33 = vadd.f32 %v604_v30, %v739_v16  ;;  %v265_v39 = vpack.c.bf16 %v251_v28, %v250_v20 }
  0xe0   :  { %v201_v34 = vpop.f32.mrf.mxu0 }
  0xe1   :  { %332 = vst.msk [vmem:[%s900_s5 + $0xc] sm:$0xf] %vm328_vm2, %v553_v31  ;;  %v551_v35 = vpack.c.bf16 %v249_v32, %v249_v32  ;;  %v254_v36 = vmax.f32 %v210_v33, 0.0  ;;  %v202_v37 = vadd.f32 %v739_v16, %v201_v34  ;;  %v264_v38 = vpack.c.bf16 %v249_v32, %v248_v24 }
  0xe2   :  { %v605_v40 = vpop.f32.mrf.mxu0 }
  0xe3   :  { %330 = vst.msk [vmem:[%s900_s5 + $0x4] sm:$0xf] %vm328_vm2, %v551_v35  ;;  %v556_v41 = vpack.c.bf16 %v254_v36, %v254_v36  ;;  %v252_v42 = vmax.f32 %v202_v37, 0.0  ;;  %v213_v43 = vadd.f32 %v605_v40, %v739_v16  ;;  %616 = vmatprep.mubr.msk.bf16.mxu1 %vm353_vm3, %v264_v38 }
  0xe4   :  { %v204_v44 = vpop.f32.mrf.mxu0  ;;  %617 = vmatmul.mubr.msk.bf16.vlgmr.msra.gmra.mxu1 %vm353_vm3, %v265_v39 }
  0xe5   :  { %335 = vst.msk [vmem:[%s900_s5 + $0x18] sm:$0xf] %vm328_vm2, %v556_v41  ;;  %v554_v45 = vpack.c.bf16 %v252_v42, %v252_v42  ;;  %v255_v46 = vmax.f32 %v213_v43, 0.0  ;;  %v205_v47 = vadd.f32 %v739_v16, %v204_v44 }
  0xe6   :  { %v608_v48 = vpop.f32.mrf.mxu0 }
  0xe7   :  { %333 = vst.msk [vmem:[%s900_s5 + $0x10] sm:$0xf] %vm328_vm2, %v554_v45  ;;  %v557_v49 = vpack.c.bf16 %v255_v46, %v255_v46  ;;  %v253_v50 = vmax.f32 %v205_v47, 0.0  ;;  %v226_v51 = vadd.f32 %v608_v48, %v739_v16  ;;  %v267_v57 = vpack.c.bf16 %v255_v46, %v254_v36 }
  0xe8   :  { %v217_v52 = vpop.f32.mrf.mxu0 }
  0xe9   :  { %336 = vst.msk [vmem:[%s900_s5 + $0x1c] sm:$0xf] %vm328_vm2, %v557_v49  ;;  %v266_v53 = vpack.c.bf16 %v253_v50, %v252_v42  ;;  %v555_v54 = vpack.c.bf16 %v253_v50, %v253_v50  ;;  %v258_v55 = vmax.f32 %v226_v51, 0.0  ;;  %v218_v56 = vadd.f32 %v739_v16, %v217_v52 }
  0xea   :  { %v609_v58 = vpop.f32.mrf.mxu0 }
  0xeb   :  { %334 = vst.msk [vmem:[%s900_s5 + $0x14] sm:$0xf] %vm328_vm2, %v555_v54  ;;  %v560_v59 = vpack.c.bf16 %v258_v55, %v258_v55  ;;  %v256_v60 = vmax.f32 %v218_v56, 0.0  ;;  %v229_v61 = vadd.f32 %v609_v58, %v739_v16  ;;  %620 = vmatprep.mubr.msk.bf16.mxu1 %vm353_vm3, %v266_v53 }
  0xec   :  { %v220_v62 = vpop.f32.mrf.mxu0  ;;  %621 = vmatmul.mubr.msk.bf16.gmra.mxu1 %vm353_vm3, %v267_v57 }
  0xed   :  { %339 = vst.msk [vmem:[%s900_s5 + $0x28] sm:$0xf] %vm328_vm2, %v560_v59  ;;  %v558_v63 = vpack.c.bf16 %v256_v60, %v256_v60  ;;  %v259_v0 = vmax.f32 %v229_v61, 0.0  ;;  %v221_v1 = vadd.f32 %v739_v16, %v220_v62 }
  0xee   :  { %v612_v2 = vpop.f32.mrf.mxu0 }
  0xef   :  { %337 = vst.msk [vmem:[%s900_s5 + $0x20] sm:$0xf] %vm328_vm2, %v558_v63  ;;  %v561_v3 = vpack.c.bf16 %v259_v0, %v259_v0  ;;  %v257_v4 = vmax.f32 %v221_v1, 0.0  ;;  %v242_v5 = vadd.f32 %v612_v2, %v739_v16  ;;  %v269_v11 = vpack.c.bf16 %v259_v0, %v258_v55 }
  0xf0   :  { %v233_v6 = vpop.f32.mrf.mxu0 }
  0xf1   :  { %340 = vst.msk [vmem:[%s900_s5 + $0x2c] sm:$0xf] %vm328_vm2, %v561_v3  ;;  %v268_v7 = vpack.c.bf16 %v257_v4, %v256_v60  ;;  %v559_v8 = vpack.c.bf16 %v257_v4, %v257_v4  ;;  %v262_v9 = vmax.f32 %v242_v5, 0.0  ;;  %v234_v10 = vadd.f32 %v739_v16, %v233_v6 }
  0xf2   :  { %v613_v12 = vpop.f32.mrf.mxu0 }
  0xf3   :  { %338 = vst.msk [vmem:[%s900_s5 + $0x24] sm:$0xf] %vm328_vm2, %v559_v8  ;;  %v564_v13 = vpack.c.bf16 %v262_v9, %v262_v9  ;;  %v260_v14 = vmax.f32 %v234_v10, 0.0  ;;  %v245_v15 = vadd.f32 %v613_v12, %v739_v16  ;;  %624 = vmatprep.mubr.msk.bf16.mxu1 %vm353_vm3, %v268_v7 }
  0xf4   :  { %v236_v17 = vpop.f32.mrf.mxu0  ;;  %625 = vmatmul.mubr.msk.bf16.gmra.mxu1 %vm353_vm3, %v269_v11 }
  0xf5   :  { %343 = vst.msk [vmem:[%s900_s5 + $0x38] sm:$0xf] %vm328_vm2, %v564_v13  ;;  %v562_v18 = vpack.c.bf16 %v260_v14, %v260_v14  ;;  %v263_v19 = vmax.f32 %v245_v15, 0.0  ;;  %v237_v20 = vadd.f32 %v739_v16, %v236_v17  ;;  %v541_v16 = vld [vmem:[%s901_s4] ss:$0 sm:$0xff] }
  0xf7   :  { %341 = vst.msk [vmem:[%s900_s5 + $0x30] sm:$0xf] %vm328_vm2, %v562_v18  ;;  %v565_v21 = vpack.c.bf16 %v263_v19, %v263_v19  ;;  %v261_v22 = vmax.f32 %v237_v20, 0.0  ;;  %v271_v25 = vpack.c.bf16 %v263_v19, %v262_v9 }
  0xf9   :  { %344 = vst.msk [vmem:[%s900_s5 + $0x3c] sm:$0xf] %vm328_vm2, %v565_v21  ;;  %v270_v23 = vpack.c.bf16 %v261_v22, %v260_v14  ;;  %v563_v24 = vpack.c.bf16 %v261_v22, %v261_v22 }
  0xfb   :  { %342 = vst.msk [vmem:[%s900_s5 + $0x34] sm:$0xf] %vm328_vm2, %v563_v24  ;;  %628 = vmatprep.mubr.msk.bf16.mxu1 %vm353_vm3, %v270_v23 }
  0xfc   :  { %629 = vmatmul.mubr.msk.bf16.gmra.mxu1 %vm353_vm3, %v271_v25 }
 0x1a4   :  { %v618_v26 = vpop.f32.mrf.mxu1 }
 0x1a5   :  { %v424_v27 = vadd.f32 %v618_v26, %v541_v16 }
 0x1a6   :  { %v415_v28 = vpop.f32.mrf.mxu1 }
 0x1a7   :  { %481 = vst.msk [vmem:[%s902_s6 + $0x10] sm:$0xff] %vm478_vm4, %v424_v27  ;;  %v416_v29 = vadd.f32 %v541_v16, %v415_v28 }
 0x1a8   :  { %v619_v30 = vpop.f32.mrf.mxu1 }
 0x1a9   :  { %479 = vst.msk [vmem:[%s902_s6] sm:$0xff] %vm478_vm4, %v416_v29  ;;  %v427_v31 = vadd.f32 %v619_v30, %v541_v16 }
 0x1aa   :  { %v418_v32 = vpop.f32.mrf.mxu1 }
 0x1ab   :  { %482 = vst.msk [vmem:[%s902_s6 + $0x18] sm:$0xff] %vm478_vm4, %v427_v31  ;;  %v419_v33 = vadd.f32 %v541_v16, %v418_v32 }
 0x1ac   :  { %v622_v34 = vpop.f32.mrf.mxu1 }
 0x1ad   :  { %480 = vst.msk [vmem:[%s902_s6 + $0x8] sm:$0xff] %vm478_vm4, %v419_v33  ;;  %v440_v35 = vadd.f32 %v622_v34, %v541_v16 }
 0x1ae   :  { %v431_v36 = vpop.f32.mrf.mxu1 }
 0x1af   :  { %485 = vst.msk [vmem:[%s902_s6 + $0x30] sm:$0xff] %vm478_vm4, %v440_v35  ;;  %v432_v37 = vadd.f32 %v541_v16, %v431_v36 }
 0x1b0   :  { %v623_v38 = vpop.f32.mrf.mxu1 }
 0x1b1   :  { %483 = vst.msk [vmem:[%s902_s6 + $0x20] sm:$0xff] %vm478_vm4, %v432_v37  ;;  %v443_v39 = vadd.f32 %v623_v38, %v541_v16 }
 0x1b2   :  { %v434_v40 = vpop.f32.mrf.mxu1 }
 0x1b3   :  { %486 = vst.msk [vmem:[%s902_s6 + $0x38] sm:$0xff] %vm478_vm4, %v443_v39  ;;  %v435_v41 = vadd.f32 %v541_v16, %v434_v40 }
 0x1b4   :  { %v626_v42 = vpop.f32.mrf.mxu1 }
 0x1b5   :  { %484 = vst.msk [vmem:[%s902_s6 + $0x28] sm:$0xff] %vm478_vm4, %v435_v41  ;;  %v456_v43 = vadd.f32 %v626_v42, %v541_v16 }
 0x1b6   :  { %v447_v44 = vpop.f32.mrf.mxu1 }
 0x1b7   :  { %489 = vst.msk [vmem:[%s902_s6 + $0x50] sm:$0xff] %vm478_vm4, %v456_v43  ;;  %v448_v45 = vadd.f32 %v541_v16, %v447_v44 }
 0x1b8   :  { %v627_v46 = vpop.f32.mrf.mxu1 }
 0x1b9   :  { %487 = vst.msk [vmem:[%s902_s6 + $0x40] sm:$0xff] %vm478_vm4, %v448_v45  ;;  %v459_v47 = vadd.f32 %v627_v46, %v541_v16 }
 0x1ba   :  { %v450_v48 = vpop.f32.mrf.mxu1 }
 0x1bb   :  { %490 = vst.msk [vmem:[%s902_s6 + $0x58] sm:$0xff] %vm478_vm4, %v459_v47  ;;  %v451_v49 = vadd.f32 %v541_v16, %v450_v48 }
 0x1bc   :  { %v630_v50 = vpop.f32.mrf.mxu1 }
 0x1bd   :  { %488 = vst.msk [vmem:[%s902_s6 + $0x48] sm:$0xff] %vm478_vm4, %v451_v49  ;;  %v472_v51 = vadd.f32 %v630_v50, %v541_v16 }
 0x1be   :  { %v463_v52 = vpop.f32.mrf.mxu1 }
 0x1bf   :  { %493 = vst.msk [vmem:[%s902_s6 + $0x70] sm:$0xff] %vm478_vm4, %v472_v51  ;;  %v464_v53 = vadd.f32 %v541_v16, %v463_v52 }
 0x1c0   :  { %v631_v54 = vpop.f32.mrf.mxu1 }
 0x1c1   :  { %491 = vst.msk [vmem:[%s902_s6 + $0x60] sm:$0xff] %vm478_vm4, %v464_v53  ;;  %v475_v55 = vadd.f32 %v631_v54, %v541_v16 }
 0x1c2   :  { %v466_v56 = vpop.f32.mrf.mxu1 }
 0x1c3   :  { %494 = vst.msk [vmem:[%s902_s6 + $0x78] sm:$0xff] %vm478_vm4, %v475_v55  ;;  %v467_v57 = vadd.f32 %v541_v16, %v466_v56 }
 0x1c5   :  { %492 = vst.msk [vmem:[%s902_s6 + $0x68] sm:$0xff] %vm478_vm4, %v467_v57 }

// kernel: e3rf_forward.4
= control target key start
LH: loop header
LB: loop body
LE: loop exit
PB: predicated region body
PF: predicated region fallthrough
CT: control target
= control target key end

     0   :  { %vm366_vm0 = vcmask 1044480   ;;  %vm367_vm1 = vcmask 1045504   ;;  %v1982_v1 = vmov 65535   ;;  %vm269_vm2 = vcmask 220160   ;;  %s2837_s1 = inlined_call_operand.vmem [shape: bf16[27,8], index: 1, kind: input, shape index: {}]   ;;  %s2838_s0 = inlined_call_operand.vmem [shape: bf16[512,27], index: 0, kind: input, shape index: {}]   ;;  %s2839_s3 = inlined_call_operand.vmem [shape: bf16[8,27], index: 3, kind: input, shape index: {}]   ;;  %s2840_s2 = inlined_call_operand.vmem [shape: f32[1,8], index: 2, kind: input, shape index: {}]   ;;  %s2841_s5 = inlined_call_operand.vmem [shape: bf16[512,8], index: 5, kind: output, shape index: {0}]   ;;  %s2842_s4 = inlined_call_operand.vmem [shape: f32[1,27], index: 4, kind: input, shape index: {}]   ;;  %s2843_s6 = inlined_call_operand.vmem [shape: f32[512,27], index: 6, kind: output, shape index: {1}]  }
   0x1   :  { %v1948_v0 = vld [vmem:[%s2837_s1 + $0x8] sm:$0x3f]   ;;  %v368_v2 = vsel %vm366_vm0, 4294967295, %v1982_v1  ;;  %v1950_v4 = vld [vmem:[%s2838_s0] sm:$0xff]   ;;  %v1952_v8 = vld [vmem:[%s2838_s0 + $0x10] sm:$0xff]   ;;  %vm1152_vm3 = vcmask 1043456  }
   0x2   :  { %v369_v3 = vsel %vm367_vm1, %v368_v2, 0  ;;  %v1949_v6 = vld [vmem:[%s2837_s1] sm:$0xff]   ;;  %1816 = vmatprep.mubr.msk.bf16.mxu0 %vm269_vm2, %v1950_v4  ;;  %v1951_v7 = vld [vmem:[%s2838_s0 + $0x8] sm:$0xff]   ;;  %v1953_v9 = vld [vmem:[%s2838_s0 + $0x18] sm:$0xff]   ;;  %vm982_vm4 = vcmask 60416   ;;  %vm1055_vm5 = vcmask 64512  }
   0x3   :  { %v371_v5 = vand.u32 %v1948_v0, %v369_v3  ;;  %v1954_v10 = vld [vmem:[%s2838_s0 + $0x20] sm:$0xff]   ;;  %v1955_v11 = vld [vmem:[%s2838_s0 + $0x28] sm:$0xff]   ;;  %v1956_v12 = vld [vmem:[%s2838_s0 + $0x30] sm:$0xff]  }
   0x4   :  { %v1957_v13 = vld [vmem:[%s2838_s0 + $0x38] sm:$0xff]   ;;  %v1958_v14 = vld [vmem:[%s2838_s0 + $0x40] sm:$0xff]   ;;  %v1959_v15 = vld [vmem:[%s2838_s0 + $0x48] sm:$0xff]  }
   0x5   :  { %1812 = vmatprep.subr.bf16.mxu0 %v371_v5  ;;  %v1960_v16 = vld [vmem:[%s2838_s0 + $0x50] sm:$0xff]   ;;  %v1961_v17 = vld [vmem:[%s2838_s0 + $0x58] sm:$0xff]   ;;  %v1962_v18 = vld [vmem:[%s2838_s0 + $0x60] sm:$0xff]  }
   0x6   :  { %1813 = vmatpush3.bf16.msra.mxu0 %v371_v5  ;;  %v1963_v19 = vld [vmem:[%s2838_s0 + $0x68] sm:$0xff]   ;;  %v1964_v20 = vld [vmem:[%s2838_s0 + $0x70] sm:$0xff]   ;;  %v1965_v21 = vld [vmem:[%s2838_s0 + $0x78] sm:$0xff]  }
   0x7   :  { %1814 = vmatprep.subr.bf16.mxu0 %v1949_v6  ;;  %v1966_v22 = vld [vmem:[%s2838_s0 + $0x80] sm:$0xff]   ;;  %v1967_v23 = vld [vmem:[%s2838_s0 + $0x88] sm:$0xff]   ;;  %v1968_v24 = vld [vmem:[%s2838_s0 + $0x90] sm:$0xff]  }
   0x8   :  { %v1969_v25 = vld [vmem:[%s2838_s0 + $0x98] sm:$0xff]   ;;  %v1970_v26 = vld [vmem:[%s2838_s0 + $0xa0] sm:$0xff]   ;;  %v1971_v29 = vld [vmem:[%s2838_s0 + $0xa8] sm:$0xff]  }
   0x9   :  { %v1047_v27 = vld [vmem:[%s2839_s3] sm:$0xf]  ;;  %v1972_v30 = vld [vmem:[%s2838_s0 + $0xb0] sm:$0xff]   ;;  %v1973_v31 = vld [vmem:[%s2838_s0 + $0xb8] sm:$0xff]  }
   0xa   :  { %1815 = vmatpush3.bf16.msra.mxu0 %v1949_v6  ;;  %1946 = vmatprep.subr.msk.bf16.mxu1 %vm1152_vm3, %v1047_v27  ;;  %v1154_v28 = vsel %vm1152_vm3, %v1047_v27, 0  ;;  %v1974_v32 = vld [vmem:[%s2838_s0 + $0xc0] sm:$0xff]   ;;  %v1975_v33 = vld [vmem:[%s2838_s0 + $0xc8] sm:$0xff]   ;;  %v1976_v34 = vld [vmem:[%s2838_s0 + $0xd0] sm:$0xff]  }
   0xb   :  { %1881 = vmatpush3.bf16.msra.mxu1 %v1154_v28  ;;  %v1977_v35 = vld [vmem:[%s2838_s0 + $0xd8] sm:$0xff]   ;;  %v1978_v36 = vld [vmem:[%s2838_s0 + $0xe0] sm:$0xff]   ;;  %v1979_v37 = vld [vmem:[%s2838_s0 + $0xe8] sm:$0xff]  }
   0xc   :  { %v1980_v38 = vld [vmem:[%s2838_s0 + $0xf0] sm:$0xff]   ;;  %v1981_v39 = vld [vmem:[%s2838_s0 + $0xf8] sm:$0xff]   ;;  %v2158_v40 = vld [vmem:[%s2840_s2] ss:$0 sm:$0xff] }
   0xd   :  { %1817 = vmatmul.mubr.msk.bf16.vlgmr.msra.gmra.mxu0 %vm269_vm2, %v1951_v7 }
   0xe   :  { %1820 = vmatprep.mubr.msk.bf16.mxu0 %vm269_vm2, %v1952_v8 }
  0x15   :  { %1821 = vmatmul.mubr.msk.bf16.gmra.mxu0 %vm269_vm2, %v1953_v9 }
  0x16   :  { %1824 = vmatprep.mubr.msk.bf16.mxu0 %vm269_vm2, %v1954_v10 }
  0x1d   :  { %1825 = vmatmul.mubr.msk.bf16.gmra.mxu0 %vm269_vm2, %v1955_v11 }
  0x1e   :  { %1828 = vmatprep.mubr.msk.bf16.mxu0 %vm269_vm2, %v1956_v12 }
  0x25   :  { %1829 = vmatmul.mubr.msk.bf16.gmra.mxu0 %vm269_vm2, %v1957_v13 }
  0x26   :  { %1832 = vmatprep.mubr.msk.bf16.mxu0 %vm269_vm2, %v1958_v14 }
  0x2d   :  { %1833 = vmatmul.mubr.msk.bf16.gmra.mxu0 %vm269_vm2, %v1959_v15 }
  0x2e   :  { %1836 = vmatprep.mubr.msk.bf16.mxu0 %vm269_vm2, %v1960_v16 }
  0x35   :  { %1837 = vmatmul.mubr.msk.bf16.gmra.mxu0 %vm269_vm2, %v1961_v17 }
  0x36   :  { %1840 = vmatprep.mubr.msk.bf16.mxu0 %vm269_vm2, %v1962_v18 }
  0x3d   :  { %1841 = vmatmul.mubr.msk.bf16.gmra.mxu0 %vm269_vm2, %v1963_v19 }
  0x3e   :  { %1844 = vmatprep.mubr.msk.bf16.mxu0 %vm269_vm2, %v1964_v20 }
  0x45   :  { %1845 = vmatmul.mubr.msk.bf16.gmra.mxu0 %vm269_vm2, %v1965_v21 }
  0x46   :  { %1848 = vmatprep.mubr.msk.bf16.mxu0 %vm269_vm2, %v1966_v22 }
  0x4d   :  { %1849 = vmatmul.mubr.msk.bf16.gmra.mxu0 %vm269_vm2, %v1967_v23 }
  0x4e   :  { %1852 = vmatprep.mubr.msk.bf16.mxu0 %vm269_vm2, %v1968_v24 }
  0x55   :  { %1853 = vmatmul.mubr.msk.bf16.gmra.mxu0 %vm269_vm2, %v1969_v25 }
  0x56   :  { %1856 = vmatprep.mubr.msk.bf16.mxu0 %vm269_vm2, %v1970_v26 }
  0x5d   :  { %1857 = vmatmul.mubr.msk.bf16.gmra.mxu0 %vm269_vm2, %v1971_v29 }
  0x5e   :  { %1860 = vmatprep.mubr.msk.bf16.mxu0 %vm269_vm2, %v1972_v30 }
  0x65   :  { %1861 = vmatmul.mubr.msk.bf16.gmra.mxu0 %vm269_vm2, %v1973_v31 }
  0x66   :  { %1864 = vmatprep.mubr.msk.bf16.mxu0 %vm269_vm2, %v1974_v32 }
  0x6d   :  { %1865 = vmatmul.mubr.msk.bf16.gmra.mxu0 %vm269_vm2, %v1975_v33 }
  0x6e   :  { %1868 = vmatprep.mubr.msk.bf16.mxu0 %vm269_vm2, %v1976_v34 }
  0x75   :  { %1869 = vmatmul.mubr.msk.bf16.gmra.mxu0 %vm269_vm2, %v1977_v35 }
  0x76   :  { %1872 = vmatprep.mubr.msk.bf16.mxu0 %vm269_vm2, %v1978_v36 }
  0x7d   :  { %1873 = vmatmul.mubr.msk.bf16.gmra.mxu0 %vm269_vm2, %v1979_v37 }
  0x7e   :  { %1876 = vmatprep.mubr.msk.bf16.mxu0 %vm269_vm2, %v1980_v38 }
  0x85   :  { %1877 = vmatmul.mubr.msk.bf16.gmra.mxu0 %vm269_vm2, %v1981_v39 }
  0xcd   :  { %v1818_v41 = vpop.f32.mrf.mxu0 }
  0xce   :  { %v416_v42 = vadd.f32 %v1818_v41, %v2158_v40 }
  0xcf   :  { %v407_v43 = vpop.f32.mrf.mxu0 }
  0xd0   :  { %v664_v44 = vmax.f32 %v416_v42, 0.0  ;;  %v408_v45 = vadd.f32 %v2158_v40, %v407_v43 }
  0xd1   :  { %v1819_v46 = vpop.f32.mrf.mxu0 }
  0xd2   :  { %v1683_v47 = vpack.c.bf16 %v664_v44, %v664_v44  ;;  %v662_v48 = vmax.f32 %v408_v45, 0.0  ;;  %v419_v49 = vadd.f32 %v1819_v46, %v2158_v40 }
  0xd3   :  { %v410_v50 = vpop.f32.mrf.mxu0 }
  0xd4   :  { %985 = vst.msk [vmem:[%s2841_s5 + $0x8] sm:$0xf] %vm982_vm4, %v1683_v47  ;;  %v1681_v51 = vpack.c.bf16 %v662_v48, %v662_v48  ;;  %v665_v52 = vmax.f32 %v419_v49, 0.0  ;;  %v411_v53 = vadd.f32 %v2158_v40, %v410_v50 }
  0xd5   :  { %v1822_v54 = vpop.f32.mrf.mxu0 }
  0xd6   :  { %983 = vst.msk [vmem:[%s2841_s5] sm:$0xf] %vm982_vm4, %v1681_v51  ;;  %v1684_v55 = vpack.c.bf16 %v665_v52, %v665_v52  ;;  %v663_v56 = vmax.f32 %v411_v53, 0.0  ;;  %v432_v57 = vadd.f32 %v1822_v54, %v2158_v40  ;;  %v727_v63 = vpack.c.bf16 %v665_v52, %v664_v44 }
  0xd7   :  { %v423_v58 = vpop.f32.mrf.mxu0 }
  0xd8   :  { %986 = vst.msk [vmem:[%s2841_s5 + $0xc] sm:$0xf] %vm982_vm4, %v1684_v55  ;;  %v1682_v59 = vpack.c.bf16 %v663_v56, %v663_v56  ;;  %v668_v60 = vmax.f32 %v432_v57, 0.0  ;;  %v424_v61 = vadd.f32 %v2158_v40, %v423_v58  ;;  %v726_v62 = vpack.c.bf16 %v663_v56, %v662_v48 }
  0xd9   :  { %v1823_v0 = vpop.f32.mrf.mxu0 }
  0xda   :  { %984 = vst.msk [vmem:[%s2841_s5 + $0x4] sm:$0xf] %vm982_vm4, %v1682_v59  ;;  %v1687_v1 = vpack.c.bf16 %v668_v60, %v668_v60  ;;  %v666_v2 = vmax.f32 %v424_v61, 0.0  ;;  %v435_v3 = vadd.f32 %v1823_v0, %v2158_v40  ;;  %1882 = vmatprep.mubr.msk.bf16.mxu1 %vm1055_vm5, %v726_v62 }
  0xdb   :  { %v426_v4 = vpop.f32.mrf.mxu0  ;;  %1883 = vmatmul.mubr.msk.bf16.vlgmr.msra.gmra.mxu1 %vm1055_vm5, %v727_v63 }
  0xdc   :  { %989 = vst.msk [vmem:[%s2841_s5 + $0x18] sm:$0xf] %vm982_vm4, %v1687_v1  ;;  %v1685_v5 = vpack.c.bf16 %v666_v2, %v666_v2  ;;  %v669_v6 = vmax.f32 %v435_v3, 0.0  ;;  %v427_v7 = vadd.f32 %v2158_v40, %v426_v4 }
  0xdd   :  { %v1826_v8 = vpop.f32.mrf.mxu0 }
  0xde   :  { %987 = vst.msk [vmem:[%s2841_s5 + $0x10] sm:$0xf] %vm982_vm4, %v1685_v5  ;;  %v1688_v9 = vpack.c.bf16 %v669_v6, %v669_v6  ;;  %v667_v10 = vmax.f32 %v427_v7, 0.0  ;;  %v448_v11 = vadd.f32 %v1826_v8, %v2158_v40  ;;  %v729_v17 = vpack.c.bf16 %v669_v6, %v668_v60 }
  0xdf   :  { %v439_v12 = vpop.f32.mrf.mxu0 }
  0xe0   :  { %990 = vst.msk [vmem:[%s2841_s5 + $0x1c] sm:$0xf] %vm982_vm4, %v1688_v9  ;;  %v728_v13 = vpack.c.bf16 %v667_v10, %v666_v2  ;;  %v1686_v14 = vpack.c.bf16 %v667_v10, %v667_v10  ;;  %v672_v15 = vmax.f32 %v448_v11, 0.0  ;;  %v440_v16 = vadd.f32 %v2158_v40, %v439_v12 }
  0xe1   :  { %v1827_v18 = vpop.f32.mrf.mxu0 }
  0xe2   :  { %988 = vst.msk [vmem:[%s2841_s5 + $0x14] sm:$0xf] %vm982_vm4, %v1686_v14  ;;  %v1691_v19 = vpack.c.bf16 %v672_v15, %v672_v15  ;;  %v670_v20 = vmax.f32 %v440_v16, 0.0  ;;  %v451_v21 = vadd.f32 %v1827_v18, %v2158_v40  ;;  %1886 = vmatprep.mubr.msk.bf16.mxu1 %vm1055_vm5, %v728_v13 }
  0xe3   :  { %v442_v22 = vpop.f32.mrf.mxu0  ;;  %1887 = vmatmul.mubr.msk.bf16.gmra.mxu1 %vm1055_vm5, %v729_v17 }
  0xe4   :  { %993 = vst.msk [vmem:[%s2841_s5 + $0x28] sm:$0xf] %vm982_vm4, %v1691_v19  ;;  %v1689_v23 = vpack.c.bf16 %v670_v20, %v670_v20  ;;  %v673_v24 = vmax.f32 %v451_v21, 0.0  ;;  %v443_v25 = vadd.f32 %v2158_v40, %v442_v22 }
  0xe5   :  { %v1830_v26 = vpop.f32.mrf.mxu0 }
  0xe6   :  { %991 = vst.msk [vmem:[%s2841_s5 + $0x20] sm:$0xf] %vm982_vm4, %v1689_v23  ;;  %v1692_v27 = vpack.c.bf16 %v673_v24, %v673_v24  ;;  %v671_v28 = vmax.f32 %v443_v25, 0.0  ;;  %v464_v29 = vadd.f32 %v1830_v26, %v2158_v40  ;;  %v731_v35 = vpack.c.bf16 %v673_v24, %v672_v15 }
  0xe7   :  { %v455_v30 = vpop.f32.mrf.mxu0 }
  0xe8   :  { %994 = vst.msk [vmem:[%s2841_s5 + $0x2c] sm:$0xf] %vm982_vm4, %v1692_v27  ;;  %v730_v31 = vpack.c.bf16 %v671_v28, %v670_v20  ;;  %v1690_v32 = vpack.c.bf16 %v671_v28, %v671_v28  ;;  %v676_v33 = vmax.f32 %v464_v29, 0.0  ;;  %v456_v34 = vadd.f32 %v2158_v40, %v455_v30 }
  0xe9   :  { %v1831_v36 = vpop.f32.mrf.mxu0 }
  0xea   :  { %992 = vst.msk [vmem:[%s2841_s5 + $0x24] sm:$0xf] %vm982_vm4, %v1690_v32  ;;  %v1695_v37 = vpack.c.bf16 %v676_v33, %v676_v33  ;;  %v674_v38 = vmax.f32 %v456_v34, 0.0  ;;  %v467_v39 = vadd.f32 %v1831_v36, %v2158_v40  ;;  %1890 = vmatprep.mubr.msk.bf16.mxu1 %vm1055_vm5, %v730_v31 }
  0xeb   :  { %v458_v41 = vpop.f32.mrf.mxu0  ;;  %1891 = vmatmul.mubr.msk.bf16.gmra.mxu1 %vm1055_vm5, %v731_v35 }
  0xec   :  { %997 = vst.msk [vmem:[%s2841_s5 + $0x38] sm:$0xf] %vm982_vm4, %v1695_v37  ;;  %v1693_v42 = vpack.c.bf16 %v674_v38, %v674_v38  ;;  %v677_v43 = vmax.f32 %v467_v39, 0.0  ;;  %v459_v44 = vadd.f32 %v2158_v40, %v458_v41 }
  0xed   :  { %v1834_v45 = vpop.f32.mrf.mxu0 }
  0xee   :  { %995 = vst.msk [vmem:[%s2841_s5 + $0x30] sm:$0xf] %vm982_vm4, %v1693_v42  ;;  %v1696_v46 = vpack.c.bf16 %v677_v43, %v677_v43  ;;  %v675_v47 = vmax.f32 %v459_v44, 0.0  ;;  %v480_v48 = vadd.f32 %v1834_v45, %v2158_v40  ;;  %v733_v54 = vpack.c.bf16 %v677_v43, %v676_v33 }
  0xef   :  { %v471_v49 = vpop.f32.mrf.mxu0 }
  0xf0   :  { %998 = vst.msk [vmem:[%s2841_s5 + $0x3c] sm:$0xf] %vm982_vm4, %v1696_v46  ;;  %v732_v50 = vpack.c.bf16 %v675_v47, %v674_v38  ;;  %v1694_v51 = vpack.c.bf16 %v675_v47, %v675_v47  ;;  %v680_v52 = vmax.f32 %v480_v48, 0.0  ;;  %v472_v53 = vadd.f32 %v2158_v40, %v471_v49 }
  0xf1   :  { %v1835_v55 = vpop.f32.mrf.mxu0 }
  0xf2   :  { %996 = vst.msk [vmem:[%s2841_s5 + $0x34] sm:$0xf] %vm982_vm4, %v1694_v51  ;;  %v1699_v56 = vpack.c.bf16 %v680_v52, %v680_v52  ;;  %v678_v57 = vmax.f32 %v472_v53, 0.0  ;;  %v483_v58 = vadd.f32 %v1835_v55, %v2158_v40  ;;  %1894 = vmatprep.mubr.msk.bf16.mxu1 %vm1055_vm5, %v732_v50 }
  0xf3   :  { %v474_v59 = vpop.f32.mrf.mxu0  ;;  %1895 = vmatmul.mubr.msk.bf16.gmra.mxu1 %vm1055_vm5, %v733_v54 }
  0xf4   :  { %1001 = vst.msk [vmem:[%s2841_s5 + $0x48] sm:$0xf] %vm982_vm4, %v1699_v56  ;;  %v1697_v60 = vpack.c.bf16 %v678_v57, %v678_v57  ;;  %v681_v61 = vmax.f32 %v483_v58, 0.0  ;;  %v475_v62 = vadd.f32 %v2158_v40, %v474_v59 }
  0xf5   :  { %v1838_v63 = vpop.f32.mrf.mxu0 }
  0xf6   :  { %999 = vst.msk [vmem:[%s2841_s5 + $0x40] sm:$0xf] %vm982_vm4, %v1697_v60  ;;  %v1700_v0 = vpack.c.bf16 %v681_v61, %v681_v61  ;;  %v679_v1 = vmax.f32 %v475_v62, 0.0  ;;  %v496_v2 = vadd.f32 %v1838_v63, %v2158_v40  ;;  %v735_v8 = vpack.c.bf16 %v681_v61, %v680_v52 }
  0xf7   :  { %v487_v3 = vpop.f32.mrf.mxu0 }
  0xf8   :  { %1002 = vst.msk [vmem:[%s2841_s5 + $0x4c] sm:$0xf] %vm982_vm4, %v1700_v0  ;;  %v734_v4 = vpack.c.bf16 %v679_v1, %v678_v57  ;;  %v1698_v5 = vpack.c.bf16 %v679_v1, %v679_v1  ;;  %v684_v6 = vmax.f32 %v496_v2, 0.0  ;;  %v488_v7 = vadd.f32 %v2158_v40, %v487_v3 }
  0xf9   :  { %v1839_v9 = vpop.f32.mrf.mxu0 }
  0xfa   :  { %1000 = vst.msk [vmem:[%s2841_s5 + $0x44] sm:$0xf] %vm982_vm4, %v1698_v5  ;;  %v1703_v10 = vpack.c.bf16 %v684_v6, %v684_v6  ;;  %v682_v11 = vmax.f32 %v488_v7, 0.0  ;;  %v499_v12 = vadd.f32 %v1839_v9, %v2158_v40  ;;  %1898 = vmatprep.mubr.msk.bf16.mxu1 %vm1055_vm5, %v734_v4 }
  0xfb   :  { %v490_v13 = vpop.f32.mrf.mxu0  ;;  %1899 = vmatmul.mubr.msk.bf16.gmra.mxu1 %vm1055_vm5, %v735_v8 }
  0xfc   :  { %1005 = vst.msk [vmem:[%s2841_s5 + $0x58] sm:$0xf] %vm982_vm4, %v1703_v10  ;;  %v1701_v14 = vpack.c.bf16 %v682_v11, %v682_v11  ;;  %v685_v15 = vmax.f32 %v499_v12, 0.0  ;;  %v491_v16 = vadd.f32 %v2158_v40, %v490_v13 }
  0xfd   :  { %v1842_v17 = vpop.f32.mrf.mxu0 }
  0xfe   :  { %1003 = vst.msk [vmem:[%s2841_s5 + $0x50] sm:$0xf] %vm982_vm4, %v1701_v14  ;;  %v1704_v18 = vpack.c.bf16 %v685_v15, %v685_v15  ;;  %v683_v19 = vmax.f32 %v491_v16, 0.0  ;;  %v512_v20 = vadd.f32 %v1842_v17, %v2158_v40  ;;  %v737_v26 = vpack.c.bf16 %v685_v15, %v684_v6 }
  0xff   :  { %v503_v21 = vpop.f32.mrf.mxu0 }
 0x100   :  { %1006 = vst.msk [vmem:[%s2841_s5 + $0x5c] sm:$0xf] %vm982_vm4, %v1704_v18  ;;  %v736_v22 = vpack.c.bf16 %v683_v19, %v682_v11  ;;  %v1702_v23 = vpack.c.bf16 %v683_v19, %v683_v19  ;;  %v688_v24 = vmax.f32 %v512_v20, 0.0  ;;  %v504_v25 = vadd.f32 %v2158_v40, %v503_v21 }
 0x101   :  { %v1843_v27 = vpop.f32.mrf.mxu0 }
 0x102   :  { %1004 = vst.msk [vmem:[%s2841_s5 + $0x54] sm:$0xf] %vm982_vm4, %v1702_v23  ;;  %v1707_v28 = vpack.c.bf16 %v688_v24, %v688_v24  ;;  %v686_v29 = vmax.f32 %v504_v25, 0.0  ;;  %v515_v30 = vadd.f32 %v1843_v27, %v2158_v40  ;;  %1902 = vmatprep.mubr.msk.bf16.mxu1 %vm1055_vm5, %v736_v22 }
 0x103   :  { %v506_v31 = vpop.f32.mrf.mxu0  ;;  %1903 = vmatmul.mubr.msk.bf16.gmra.mxu1 %vm1055_vm5, %v737_v26 }
 0x104   :  { %1009 = vst.msk [vmem:[%s2841_s5 + $0x68] sm:$0xf] %vm982_vm4, %v1707_v28  ;;  %v1705_v32 = vpack.c.bf16 %v686_v29, %v686_v29  ;;  %v689_v33 = vmax.f32 %v515_v30, 0.0  ;;  %v507_v34 = vadd.f32 %v2158_v40, %v506_v31 }
 0x105   :  { %v1846_v35 = vpop.f32.mrf.mxu0 }
 0x106   :  { %1007 = vst.msk [vmem:[%s2841_s5 + $0x60] sm:$0xf] %vm982_vm4, %v1705_v32  ;;  %v1708_v36 = vpack.c.bf16 %v689_v33, %v689_v33  ;;  %v687_v37 = vmax.f32 %v507_v34, 0.0  ;;  %v528_v38 = vadd.f32 %v1846_v35, %v2158_v40  ;;  %v739_v45 = vpack.c.bf16 %v689_v33, %v688_v24 }
 0x107   :  { %v519_v39 = vpop.f32.mrf.mxu0 }
 0x108   :  { %1010 = vst.msk [vmem:[%s2841_s5 + $0x6c] sm:$0xf] %vm982_vm4, %v1708_v36  ;;  %v738_v41 = vpack.c.bf16 %v687_v37, %v686_v29  ;;  %v1706_v42 = vpack.c.bf16 %v687_v37, %v687_v37  ;;  %v692_v43 = vmax.f32 %v528_v38, 0.0  ;;  %v520_v44 = vadd.f32 %v2158_v40, %v519_v39 }
 0x109   :  { %v1847_v46 = vpop.f32.mrf.mxu0 }
 0x10a   :  { %1008 = vst.msk [vmem:[%s2841_s5 + $0x64] sm:$0xf] %vm982_vm4, %v1706_v42  ;;  %v1711_v47 = vpack.c.bf16 %v692_v43, %v692_v43  ;;  %v690_v48 = vmax.f32 %v520_v44, 0.0  ;;  %v531_v49 = vadd.f32 %v1847_v46, %v2158_v40  ;;  %1906 = vmatprep.mubr.msk.bf16.mxu1 %vm1055_vm5, %v738_v41 }
 0x10b   :  { %v522_v50 = vpop.f32.mrf.mxu0  ;;  %1907 = vmatmul.mubr.msk.bf16.gmra.mxu1 %vm1055_vm5, %v739_v45 }
 0x10c   :  { %1013 = vst.msk [vmem:[%s2841_s5 + $0x78] sm:$0xf] %vm982_vm4, %v1711_v47  ;;  %v1709_v51 = vpack.c.bf16 %v690_v48, %v690_v48  ;;  %v693_v52 = vmax.f32 %v531_v49, 0.0  ;;  %v523_v53 = vadd.f32 %v2158_v40, %v522_v50 }
 0x10d   :  { %v1850_v54 = vpop.f32.mrf.mxu0 }
 0x10e   :  { %1011 = vst.msk [vmem:[%s2841_s5 + $0x70] sm:$0xf] %vm982_vm4, %v1709_v51  ;;  %v1712_v55 = vpack.c.bf16 %v693_v52, %v693_v52  ;;  %v691_v56 = vmax.f32 %v523_v53, 0.0  ;;  %v544_v57 = vadd.f32 %v1850_v54, %v2158_v40  ;;  %v741_v63 = vpack.c.bf16 %v693_v52, %v692_v43 }
 0x10f   :  { %v535_v58 = vpop.f32.mrf.mxu0 }
 0x110   :  { %1014 = vst.msk [vmem:[%s2841_s5 + $0x7c] sm:$0xf] %vm982_vm4, %v1712_v55  ;;  %v740_v59 = vpack.c.bf16 %v691_v56, %v690_v48  ;;  %v1710_v60 = vpack.c.bf16 %v691_v56, %v691_v56  ;;  %v696_v61 = vmax.f32 %v544_v57, 0.0  ;;  %v536_v62 = vadd.f32 %v2158_v40, %v535_v58 }
 0x111   :  { %v1851_v0 = vpop.f32.mrf.mxu0 }
 0x112   :  { %1012 = vst.msk [vmem:[%s2841_s5 + $0x74] sm:$0xf] %vm982_vm4, %v1710_v60  ;;  %v1715_v1 = vpack.c.bf16 %v696_v61, %v696_v61  ;;  %v694_v2 = vmax.f32 %v536_v62, 0.0  ;;  %v547_v3 = vadd.f32 %v1851_v0, %v2158_v40  ;;  %1910 = vmatprep.mubr.msk.bf16.mxu1 %vm1055_vm5, %v740_v59 }
 0x113   :  { %v538_v4 = vpop.f32.mrf.mxu0  ;;  %1911 = vmatmul.mubr.msk.bf16.gmra.mxu1 %vm1055_vm5, %v741_v63 }
 0x114   :  { %1017 = vst.msk [vmem:[%s2841_s5 + $0x88] sm:$0xf] %vm982_vm4, %v1715_v1  ;;  %v1713_v5 = vpack.c.bf16 %v694_v2, %v694_v2  ;;  %v697_v6 = vmax.f32 %v547_v3, 0.0  ;;  %v539_v7 = vadd.f32 %v2158_v40, %v538_v4 }
 0x115   :  { %v1854_v8 = vpop.f32.mrf.mxu0 }
 0x116   :  { %1015 = vst.msk [vmem:[%s2841_s5 + $0x80] sm:$0xf] %vm982_vm4, %v1713_v5  ;;  %v1716_v9 = vpack.c.bf16 %v697_v6, %v697_v6  ;;  %v695_v10 = vmax.f32 %v539_v7, 0.0  ;;  %v560_v11 = vadd.f32 %v1854_v8, %v2158_v40  ;;  %v743_v17 = vpack.c.bf16 %v697_v6, %v696_v61 }
 0x117   :  { %v551_v12 = vpop.f32.mrf.mxu0 }
 0x118   :  { %1018 = vst.msk [vmem:[%s2841_s5 + $0x8c] sm:$0xf] %vm982_vm4, %v1716_v9  ;;  %v742_v13 = vpack.c.bf16 %v695_v10, %v694_v2  ;;  %v1714_v14 = vpack.c.bf16 %v695_v10, %v695_v10  ;;  %v700_v15 = vmax.f32 %v560_v11, 0.0  ;;  %v552_v16 = vadd.f32 %v2158_v40, %v551_v12 }
 0x119   :  { %v1855_v18 = vpop.f32.mrf.mxu0 }
 0x11a   :  { %1016 = vst.msk [vmem:[%s2841_s5 + $0x84] sm:$0xf] %vm982_vm4, %v1714_v14  ;;  %v1719_v19 = vpack.c.bf16 %v700_v15, %v700_v15  ;;  %v698_v20 = vmax.f32 %v552_v16, 0.0  ;;  %v563_v21 = vadd.f32 %v1855_v18, %v2158_v40  ;;  %1914 = vmatprep.mubr.msk.bf16.mxu1 %vm1055_vm5, %v742_v13 }
 0x11b   :  { %v554_v22 = vpop.f32.mrf.mxu0  ;;  %1915 = vmatmul.mubr.msk.bf16.gmra.mxu1 %vm1055_vm5, %v743_v17 }
 0x11c   :  { %1021 = vst.msk [vmem:[%s2841_s5 + $0x98] sm:$0xf] %vm982_vm4, %v1719_v19  ;;  %v1717_v23 = vpack.c.bf16 %v698_v20, %v698_v20  ;;  %v701_v24 = vmax.f32 %v563_v21, 0.0  ;;  %v555_v25 = vadd.f32 %v2158_v40, %v554_v22 }
 0x11d   :  { %v1858_v26 = vpop.f32.mrf.mxu0 }
 0x11e   :  { %1019 = vst.msk [vmem:[%s2841_s5 + $0x90] sm:$0xf] %vm982_vm4, %v1717_v23  ;;  %v1720_v27 = vpack.c.bf16 %v701_v24, %v701_v24  ;;  %v699_v28 = vmax.f32 %v555_v25, 0.0  ;;  %v576_v29 = vadd.f32 %v1858_v26, %v2158_v40  ;;  %v745_v35 = vpack.c.bf16 %v701_v24, %v700_v15 }
 0x11f   :  { %v567_v30 = vpop.f32.mrf.mxu0 }
 0x120   :  { %1022 = vst.msk [vmem:[%s2841_s5 + $0x9c] sm:$0xf] %vm982_vm4, %v1720_v27  ;;  %v744_v31 = vpack.c.bf16 %v699_v28, %v698_v20  ;;  %v1718_v32 = vpack.c.bf16 %v699_v28, %v699_v28  ;;  %v704_v33 = vmax.f32 %v576_v29, 0.0  ;;  %v568_v34 = vadd.f32 %v2158_v40, %v567_v30 }
 0x121   :  { %v1859_v36 = vpop.f32.mrf.mxu0 }
 0x122   :  { %1020 = vst.msk [vmem:[%s2841_s5 + $0x94] sm:$0xf] %vm982_vm4, %v1718_v32  ;;  %v1723_v37 = vpack.c.bf16 %v704_v33, %v704_v33  ;;  %v702_v38 = vmax.f32 %v568_v34, 0.0  ;;  %v579_v39 = vadd.f32 %v1859_v36, %v2158_v40  ;;  %1918 = vmatprep.mubr.msk.bf16.mxu1 %vm1055_vm5, %v744_v31 }
 0x123   :  { %v570_v41 = vpop.f32.mrf.mxu0  ;;  %1919 = vmatmul.mubr.msk.bf16.gmra.mxu1 %vm1055_vm5, %v745_v35 }
 0x124   :  { %1025 = vst.msk [vmem:[%s2841_s5 + $0xa8] sm:$0xf] %vm982_vm4, %v1723_v37  ;;  %v1721_v42 = vpack.c.bf16 %v702_v38, %v702_v38  ;;  %v705_v43 = vmax.f32 %v579_v39, 0.0  ;;  %v571_v44 = vadd.f32 %v2158_v40, %v570_v41 }
 0x125   :  { %v1862_v45 = vpop.f32.mrf.mxu0 }
 0x126   :  { %1023 = vst.msk [vmem:[%s2841_s5 + $0xa0] sm:$0xf] %vm982_vm4, %v1721_v42  ;;  %v1724_v46 = vpack.c.bf16 %v705_v43, %v705_v43  ;;  %v703_v47 = vmax.f32 %v571_v44, 0.0  ;;  %v592_v48 = vadd.f32 %v1862_v45, %v2158_v40  ;;  %v747_v54 = vpack.c.bf16 %v705_v43, %v704_v33 }
 0x127   :  { %v583_v49 = vpop.f32.mrf.mxu0 }
 0x128   :  { %1026 = vst.msk [vmem:[%s2841_s5 + $0xac] sm:$0xf] %vm982_vm4, %v1724_v46  ;;  %v746_v50 = vpack.c.bf16 %v703_v47, %v702_v38  ;;  %v1722_v51 = vpack.c.bf16 %v703_v47, %v703_v47  ;;  %v708_v52 = vmax.f32 %v592_v48, 0.0  ;;  %v584_v53 = vadd.f32 %v2158_v40, %v583_v49 }
 0x129   :  { %v1863_v55 = vpop.f32.mrf.mxu0 }
 0x12a   :  { %1024 = vst.msk [vmem:[%s2841_s5 + $0xa4] sm:$0xf] %vm982_vm4, %v1722_v51  ;;  %v1727_v56 = vpack.c.bf16 %v708_v52, %v708_v52  ;;  %v706_v57 = vmax.f32 %v584_v53, 0.0  ;;  %v595_v58 = vadd.f32 %v1863_v55, %v2158_v40  ;;  %1922 = vmatprep.mubr.msk.bf16.mxu1 %vm1055_vm5, %v746_v50 }
 0x12b   :  { %v586_v59 = vpop.f32.mrf.mxu0  ;;  %1923 = vmatmul.mubr.msk.bf16.gmra.mxu1 %vm1055_vm5, %v747_v54 }
 0x12c   :  { %1029 = vst.msk [vmem:[%s2841_s5 + $0xb8] sm:$0xf] %vm982_vm4, %v1727_v56  ;;  %v1725_v60 = vpack.c.bf16 %v706_v57, %v706_v57  ;;  %v709_v61 = vmax.f32 %v595_v58, 0.0  ;;  %v587_v62 = vadd.f32 %v2158_v40, %v586_v59 }
 0x12d   :  { %v1866_v63 = vpop.f32.mrf.mxu0 }
 0x12e   :  { %1027 = vst.msk [vmem:[%s2841_s5 + $0xb0] sm:$0xf] %vm982_vm4, %v1725_v60  ;;  %v1728_v0 = vpack.c.bf16 %v709_v61, %v709_v61  ;;  %v707_v1 = vmax.f32 %v587_v62, 0.0  ;;  %v608_v2 = vadd.f32 %v1866_v63, %v2158_v40  ;;  %v749_v8 = vpack.c.bf16 %v709_v61, %v708_v52 }
 0x12f   :  { %v599_v3 = vpop.f32.mrf.mxu0 }
 0x130   :  { %1030 = vst.msk [vmem:[%s2841_s5 + $0xbc] sm:$0xf] %vm982_vm4, %v1728_v0  ;;  %v748_v4 = vpack.c.bf16 %v707_v1, %v706_v57  ;;  %v1726_v5 = vpack.c.bf16 %v707_v1, %v707_v1  ;;  %v712_v6 = vmax.f32 %v608_v2, 0.0  ;;  %v600_v7 = vadd.f32 %v2158_v40, %v599_v3 }
 0x131   :  { %v1867_v9 = vpop.f32.mrf.mxu0 }
 0x132   :  { %1028 = vst.msk [vmem:[%s2841_s5 + $0xb4] sm:$0xf] %vm982_vm4, %v1726_v5  ;;  %v1731_v10 = vpack.c.bf16 %v712_v6, %v712_v6  ;;  %v710_v11 = vmax.f32 %v600_v7, 0.0  ;;  %v611_v12 = vadd.f32 %v1867_v9, %v2158_v40  ;;  %1926 = vmatprep.mubr.msk.bf16.mxu1 %vm1055_vm5, %v748_v4 }
 0x133   :  { %v602_v13 = vpop.f32.mrf.mxu0  ;;  %1927 = vmatmul.mubr.msk.bf16.gmra.mxu1 %vm1055_vm5, %v749_v8 }
 0x134   :  { %1033 = vst.msk [vmem:[%s2841_s5 + $0xc8] sm:$0xf] %vm982_vm4, %v1731_v10  ;;  %v1729_v14 = vpack.c.bf16 %v710_v11, %v710_v11  ;;  %v713_v15 = vmax.f32 %v611_v12, 0.0  ;;  %v603_v16 = vadd.f32 %v2158_v40, %v602_v13 }
 0x135   :  { %v1870_v17 = vpop.f32.mrf.mxu0 }
 0x136   :  { %1031 = vst.msk [vmem:[%s2841_s5 + $0xc0] sm:$0xf] %vm982_vm4, %v1729_v14  ;;  %v1732_v18 = vpack.c.bf16 %v713_v15, %v713_v15  ;;  %v711_v19 = vmax.f32 %v603_v16, 0.0  ;;  %v624_v20 = vadd.f32 %v1870_v17, %v2158_v40  ;;  %v751_v26 = vpack.c.bf16 %v713_v15, %v712_v6 }
 0x137   :  { %v615_v21 = vpop.f32.mrf.mxu0 }
 0x138   :  { %1034 = vst.msk [vmem:[%s2841_s5 + $0xcc] sm:$0xf] %vm982_vm4, %v1732_v18  ;;  %v750_v22 = vpack.c.bf16 %v711_v19, %v710_v11  ;;  %v1730_v23 = vpack.c.bf16 %v711_v19, %v711_v19  ;;  %v716_v24 = vmax.f32 %v624_v20, 0.0  ;;  %v616_v25 = vadd.f32 %v2158_v40, %v615_v21 }
 0x139   :  { %v1871_v27 = vpop.f32.mrf.mxu0 }
 0x13a   :  { %1032 = vst.msk [vmem:[%s2841_s5 + $0xc4] sm:$0xf] %vm982_vm4, %v1730_v23  ;;  %v1735_v28 = vpack.c.bf16 %v716_v24, %v716_v24  ;;  %v714_v29 = vmax.f32 %v616_v25, 0.0  ;;  %v627_v30 = vadd.f32 %v1871_v27, %v2158_v40  ;;  %1930 = vmatprep.mubr.msk.bf16.mxu1 %vm1055_vm5, %v750_v22 }
 0x13b   :  { %v618_v31 = vpop.f32.mrf.mxu0  ;;  %1931 = vmatmul.mubr.msk.bf16.gmra.mxu1 %vm1055_vm5, %v751_v26 }
 0x13c   :  { %1037 = vst.msk [vmem:[%s2841_s5 + $0xd8] sm:$0xf] %vm982_vm4, %v1735_v28  ;;  %v1733_v32 = vpack.c.bf16 %v714_v29, %v714_v29  ;;  %v717_v33 = vmax.f32 %v627_v30, 0.0  ;;  %v619_v34 = vadd.f32 %v2158_v40, %v618_v31 }
 0x13d   :  { %v1874_v35 = vpop.f32.mrf.mxu0 }
 0x13e   :  { %1035 = vst.msk [vmem:[%s2841_s5 + $0xd0] sm:$0xf] %vm982_vm4, %v1733_v32  ;;  %v1736_v36 = vpack.c.bf16 %v717_v33, %v717_v33  ;;  %v715_v37 = vmax.f32 %v619_v34, 0.0  ;;  %v640_v38 = vadd.f32 %v1874_v35, %v2158_v40  ;;  %v753_v45 = vpack.c.bf16 %v717_v33, %v716_v24 }
 0x13f   :  { %v631_v39 = vpop.f32.mrf.mxu0 }
 0x140   :  { %1038 = vst.msk [vmem:[%s2841_s5 + $0xdc] sm:$0xf] %vm982_vm4, %v1736_v36  ;;  %v752_v41 = vpack.c.bf16 %v715_v37, %v714_v29  ;;  %v1734_v42 = vpack.c.bf16 %v715_v37, %v715_v37  ;;  %v720_v43 = vmax.f32 %v640_v38, 0.0  ;;  %v632_v44 = vadd.f32 %v2158_v40, %v631_v39 }
 0x141   :  { %v1875_v46 = vpop.f32.mrf.mxu0 }
 0x142   :  { %1036 = vst.msk [vmem:[%s2841_s5 + $0xd4] sm:$0xf] %vm982_vm4, %v1734_v42  ;;  %v1739_v47 = vpack.c.bf16 %v720_v43, %v720_v43  ;;  %v718_v48 = vmax.f32 %v632_v44, 0.0  ;;  %v643_v49 = vadd.f32 %v1875_v46, %v2158_v40  ;;  %1934 = vmatprep.mubr.msk.bf16.mxu1 %vm1055_vm5, %v752_v41 }
 0x143   :  { %v634_v50 = vpop.f32.mrf.mxu0  ;;  %1935 = vmatmul.mubr.msk.bf16.gmra.mxu1 %vm1055_vm5, %v753_v45 }
 0x144   :  { %1041 = vst.msk [vmem:[%s2841_s5 + $0xe8] sm:$0xf] %vm982_vm4, %v1739_v47  ;;  %v1737_v51 = vpack.c.bf16 %v718_v48, %v718_v48  ;;  %v721_v52 = vmax.f32 %v643_v49, 0.0  ;;  %v635_v53 = vadd.f32 %v2158_v40, %v634_v50 }
 0x145   :  { %v1878_v54 = vpop.f32.mrf.mxu0 }
 0x146   :  { %1039 = vst.msk [vmem:[%s2841_s5 + $0xe0] sm:$0xf] %vm982_vm4, %v1737_v51  ;;  %v1740_v55 = vpack.c.bf16 %v721_v52, %v721_v52  ;;  %v719_v56 = vmax.f32 %v635_v53, 0.0  ;;  %v656_v57 = vadd.f32 %v1878_v54, %v2158_v40  ;;  %v755_v63 = vpack.c.bf16 %v721_v52, %v720_v43 }
 0x147   :  { %v647_v58 = vpop.f32.mrf.mxu0 }
 0x148   :  { %1042 = vst.msk [vmem:[%s2841_s5 + $0xec] sm:$0xf] %vm982_vm4, %v1740_v55  ;;  %v754_v59 = vpack.c.bf16 %v719_v56, %v718_v48  ;;  %v1738_v60 = vpack.c.bf16 %v719_v56, %v719_v56  ;;  %v724_v61 = vmax.f32 %v656_v57, 0.0  ;;  %v648_v62 = vadd.f32 %v2158_v40, %v647_v58 }
 0x149   :  { %v1879_v0 = vpop.f32.mrf.mxu0 }
 0x14a   :  { %1040 = vst.msk [vmem:[%s2841_s5 + $0xe4] sm:$0xf] %vm982_vm4, %v1738_v60  ;;  %v1743_v1 = vpack.c.bf16 %v724_v61, %v724_v61  ;;  %v722_v2 = vmax.f32 %v648_v62, 0.0  ;;  %v659_v3 = vadd.f32 %v1879_v0, %v2158_v40  ;;  %1938 = vmatprep.mubr.msk.bf16.mxu1 %vm1055_vm5, %v754_v59 }
 0x14b   :  { %v650_v4 = vpop.f32.mrf.mxu0  ;;  %1939 = vmatmul.mubr.msk.bf16.gmra.mxu1 %vm1055_vm5, %v755_v63 }
 0x14c   :  { %1045 = vst.msk [vmem:[%s2841_s5 + $0xf8] sm:$0xf] %vm982_vm4, %v1743_v1  ;;  %v1741_v5 = vpack.c.bf16 %v722_v2, %v722_v2  ;;  %v725_v6 = vmax.f32 %v659_v3, 0.0  ;;  %v651_v7 = vadd.f32 %v2158_v40, %v650_v4  ;;  %v2515_v40 = vld [vmem:[%s2842_s4] ss:$0 sm:$0xff] }
 0x14e   :  { %1043 = vst.msk [vmem:[%s2841_s5 + $0xf0] sm:$0xf] %vm982_vm4, %v1741_v5  ;;  %v1744_v8 = vpack.c.bf16 %v725_v6, %v725_v6  ;;  %v723_v9 = vmax.f32 %v651_v7, 0.0  ;;  %v757_v12 = vpack.c.bf16 %v725_v6, %v724_v61 }
 0x150   :  { %1046 = vst.msk [vmem:[%s2841_s5 + $0xfc] sm:$0xf] %vm982_vm4, %v1744_v8  ;;  %v756_v10 = vpack.c.bf16 %v723_v9, %v722_v2  ;;  %v1742_v11 = vpack.c.bf16 %v723_v9, %v723_v9 }
 0x152   :  { %1044 = vst.msk [vmem:[%s2841_s5 + $0xf4] sm:$0xf] %vm982_vm4, %v1742_v11  ;;  %1942 = vmatprep.mubr.msk.bf16.mxu1 %vm1055_vm5, %v756_v10 }
 0x153   :  { %1943 = vmatmul.mubr.msk.bf16.gmra.mxu1 %vm1055_vm5, %v757_v12 }
 0x19b   :  { %v1884_v13 = vpop.f32.mrf.mxu1 }
 0x19c   :  { %v1199_v14 = vadd.f32 %v1884_v13, %v2515_v40 }
 0x19d   :  { %v1190_v15 = vpop.f32.mrf.mxu1 }
 0x19e   :  { %1447 = vst.msk [vmem:[%s2843_s6 + $0x10] sm:$0xff] %vm269_vm2, %v1199_v14  ;;  %v1191_v16 = vadd.f32 %v2515_v40, %v1190_v15 }
 0x19f   :  { %v1885_v17 = vpop.f32.mrf.mxu1 }
 0x1a0   :  { %1445 = vst.msk [vmem:[%s2843_s6] sm:$0xff] %vm269_vm2, %v1191_v16  ;;  %v1202_v18 = vadd.f32 %v1885_v17, %v2515_v40 }
 0x1a1   :  { %v1193_v19 = vpop.f32.mrf.mxu1 }
 0x1a2   :  { %1448 = vst.msk [vmem:[%s2843_s6 + $0x18] sm:$0xff] %vm269_vm2, %v1202_v18  ;;  %v1194_v20 = vadd.f32 %v2515_v40, %v1193_v19 }
 0x1a3   :  { %v1888_v21 = vpop.f32.mrf.mxu1 }
 0x1a4   :  { %1446 = vst.msk [vmem:[%s2843_s6 + $0x8] sm:$0xff] %vm269_vm2, %v1194_v20  ;;  %v1215_v22 = vadd.f32 %v1888_v21, %v2515_v40 }
 0x1a5   :  { %v1206_v23 = vpop.f32.mrf.mxu1 }
 0x1a6   :  { %1451 = vst.msk [vmem:[%s2843_s6 + $0x30] sm:$0xff] %vm269_vm2, %v1215_v22  ;;  %v1207_v24 = vadd.f32 %v2515_v40, %v1206_v23 }
 0x1a7   :  { %v1889_v25 = vpop.f32.mrf.mxu1 }
 0x1a8   :  { %1449 = vst.msk [vmem:[%s2843_s6 + $0x20] sm:$0xff] %vm269_vm2, %v1207_v24  ;;  %v1218_v26 = vadd.f32 %v1889_v25, %v2515_v40 }
 0x1a9   :  { %v1209_v27 = vpop.f32.mrf.mxu1 }
 0x1aa   :  { %1452 = vst.msk [vmem:[%s2843_s6 + $0x38] sm:$0xff] %vm269_vm2, %v1218_v26  ;;  %v1210_v28 = vadd.f32 %v2515_v40, %v1209_v27 }
 0x1ab   :  { %v1892_v29 = vpop.f32.mrf.mxu1 }
 0x1ac   :  { %1450 = vst.msk [vmem:[%s2843_s6 + $0x28] sm:$0xff] %vm269_vm2, %v1210_v28  ;;  %v1231_v30 = vadd.f32 %v1892_v29, %v2515_v40 }
 0x1ad   :  { %v1222_v31 = vpop.f32.mrf.mxu1 }
 0x1ae   :  { %1455 = vst.msk [vmem:[%s2843_s6 + $0x50] sm:$0xff] %vm269_vm2, %v1231_v30  ;;  %v1223_v32 = vadd.f32 %v2515_v40, %v1222_v31 }
 0x1af   :  { %v1893_v33 = vpop.f32.mrf.mxu1 }
 0x1b0   :  { %1453 = vst.msk [vmem:[%s2843_s6 + $0x40] sm:$0xff] %vm269_vm2, %v1223_v32  ;;  %v1234_v34 = vadd.f32 %v1893_v33, %v2515_v40 }
 0x1b1   :  { %v1225_v35 = vpop.f32.mrf.mxu1 }
 0x1b2   :  { %1456 = vst.msk [vmem:[%s2843_s6 + $0x58] sm:$0xff] %vm269_vm2, %v1234_v34  ;;  %v1226_v36 = vadd.f32 %v2515_v40, %v1225_v35 }
 0x1b3   :  { %v1896_v37 = vpop.f32.mrf.mxu1 }
 0x1b4   :  { %1454 = vst.msk [vmem:[%s2843_s6 + $0x48] sm:$0xff] %vm269_vm2, %v1226_v36  ;;  %v1247_v38 = vadd.f32 %v1896_v37, %v2515_v40 }
 0x1b5   :  { %v1238_v39 = vpop.f32.mrf.mxu1 }
 0x1b6   :  { %1459 = vst.msk [vmem:[%s2843_s6 + $0x70] sm:$0xff] %vm269_vm2, %v1247_v38  ;;  %v1239_v41 = vadd.f32 %v2515_v40, %v1238_v39 }
 0x1b7   :  { %v1897_v42 = vpop.f32.mrf.mxu1 }
 0x1b8   :  { %1457 = vst.msk [vmem:[%s2843_s6 + $0x60] sm:$0xff] %vm269_vm2, %v1239_v41  ;;  %v1250_v43 = vadd.f32 %v1897_v42, %v2515_v40 }
 0x1b9   :  { %v1241_v44 = vpop.f32.mrf.mxu1 }
 0x1ba   :  { %1460 = vst.msk [vmem:[%s2843_s6 + $0x78] sm:$0xff] %vm269_vm2, %v1250_v43  ;;  %v1242_v45 = vadd.f32 %v2515_v40, %v1241_v44 }
 0x1bb   :  { %v1900_v46 = vpop.f32.mrf.mxu1 }
 0x1bc   :  { %1458 = vst.msk [vmem:[%s2843_s6 + $0x68] sm:$0xff] %vm269_vm2, %v1242_v45  ;;  %v1263_v47 = vadd.f32 %v1900_v46, %v2515_v40 }
 0x1bd   :  { %v1254_v48 = vpop.f32.mrf.mxu1 }
 0x1be   :  { %1463 = vst.msk [vmem:[%s2843_s6 + $0x90] sm:$0xff] %vm269_vm2, %v1263_v47  ;;  %v1255_v49 = vadd.f32 %v2515_v40, %v1254_v48 }
 0x1bf   :  { %v1901_v50 = vpop.f32.mrf.mxu1 }
 0x1c0   :  { %1461 = vst.msk [vmem:[%s2843_s6 + $0x80] sm:$0xff] %vm269_vm2, %v1255_v49  ;;  %v1266_v51 = vadd.f32 %v1901_v50, %v2515_v40 }
 0x1c1   :  { %v1257_v52 = vpop.f32.mrf.mxu1 }
 0x1c2   :  { %1464 = vst.msk [vmem:[%s2843_s6 + $0x98] sm:$0xff] %vm269_vm2, %v1266_v51  ;;  %v1258_v53 = vadd.f32 %v2515_v40, %v1257_v52 }
 0x1c3   :  { %v1904_v54 = vpop.f32.mrf.mxu1 }
 0x1c4   :  { %1462 = vst.msk [vmem:[%s2843_s6 + $0x88] sm:$0xff] %vm269_vm2, %v1258_v53  ;;  %v1279_v55 = vadd.f32 %v1904_v54, %v2515_v40 }
 0x1c5   :  { %v1270_v56 = vpop.f32.mrf.mxu1 }
 0x1c6   :  { %1467 = vst.msk [vmem:[%s2843_s6 + $0xb0] sm:$0xff] %vm269_vm2, %v1279_v55  ;;  %v1271_v57 = vadd.f32 %v2515_v40, %v1270_v56 }
 0x1c7   :  { %v1905_v58 = vpop.f32.mrf.mxu1 }
 0x1c8   :  { %1465 = vst.msk [vmem:[%s2843_s6 + $0xa0] sm:$0xff] %vm269_vm2, %v1271_v57  ;;  %v1282_v59 = vadd.f32 %v1905_v58, %v2515_v40 }
 0x1c9   :  { %v1273_v60 = vpop.f32.mrf.mxu1 }
 0x1ca   :  { %1468 = vst.msk [vmem:[%s2843_s6 + $0xb8] sm:$0xff] %vm269_vm2, %v1282_v59  ;;  %v1274_v61 = vadd.f32 %v2515_v40, %v1273_v60 }
 0x1cb   :  { %v1908_v62 = vpop.f32.mrf.mxu1 }
 0x1cc   :  { %1466 = vst.msk [vmem:[%s2843_s6 + $0xa8] sm:$0xff] %vm269_vm2, %v1274_v61  ;;  %v1295_v63 = vadd.f32 %v1908_v62, %v2515_v40 }
 0x1cd   :  { %v1286_v0 = vpop.f32.mrf.mxu1 }
 0x1ce   :  { %1471 = vst.msk [vmem:[%s2843_s6 + $0xd0] sm:$0xff] %vm269_vm2, %v1295_v63  ;;  %v1287_v1 = vadd.f32 %v2515_v40, %v1286_v0 }
 0x1cf   :  { %v1909_v2 = vpop.f32.mrf.mxu1 }
 0x1d0   :  { %1469 = vst.msk [vmem:[%s2843_s6 + $0xc0] sm:$0xff] %vm269_vm2, %v1287_v1  ;;  %v1298_v3 = vadd.f32 %v1909_v2, %v2515_v40 }
 0x1d1   :  { %v1289_v4 = vpop.f32.mrf.mxu1 }
 0x1d2   :  { %1472 = vst.msk [vmem:[%s2843_s6 + $0xd8] sm:$0xff] %vm269_vm2, %v1298_v3  ;;  %v1290_v5 = vadd.f32 %v2515_v40, %v1289_v4 }
 0x1d3   :  { %v1912_v6 = vpop.f32.mrf.mxu1 }
 0x1d4   :  { %1470 = vst.msk [vmem:[%s2843_s6 + $0xc8] sm:$0xff] %vm269_vm2, %v1290_v5  ;;  %v1311_v7 = vadd.f32 %v1912_v6, %v2515_v40 }
 0x1d5   :  { %v1302_v8 = vpop.f32.mrf.mxu1 }
 0x1d6   :  { %1475 = vst.msk [vmem:[%s2843_s6 + $0xf0] sm:$0xff] %vm269_vm2, %v1311_v7  ;;  %v1303_v9 = vadd.f32 %v2515_v40, %v1302_v8 }
 0x1d7   :  { %v1913_v10 = vpop.f32.mrf.mxu1 }
 0x1d8   :  { %1473 = vst.msk [vmem:[%s2843_s6 + $0xe0] sm:$0xff] %vm269_vm2, %v1303_v9  ;;  %v1314_v11 = vadd.f32 %v1913_v10, %v2515_v40 }
 0x1d9   :  { %v1305_v12 = vpop.f32.mrf.mxu1 }
 0x1da   :  { %1476 = vst.msk [vmem:[%s2843_s6 + $0xf8] sm:$0xff] %vm269_vm2, %v1314_v11  ;;  %v1306_v13 = vadd.f32 %v2515_v40, %v1305_v12 }
 0x1db   :  { %v1916_v14 = vpop.f32.mrf.mxu1 }
 0x1dc   :  { %1474 = vst.msk [vmem:[%s2843_s6 + $0xe8] sm:$0xff] %vm269_vm2, %v1306_v13  ;;  %v1327_v15 = vadd.f32 %v1916_v14, %v2515_v40 }
 0x1dd   :  { %v1318_v16 = vpop.f32.mrf.mxu1 }
 0x1de   :  { %1479 = vst.msk [vmem:[%s2843_s6 + $0x110] sm:$0xff] %vm269_vm2, %v1327_v15  ;;  %v1319_v17 = vadd.f32 %v2515_v40, %v1318_v16 }
 0x1df   :  { %v1917_v18 = vpop.f32.mrf.mxu1 }
 0x1e0   :  { %1477 = vst.msk [vmem:[%s2843_s6 + $0x100] sm:$0xff] %vm269_vm2, %v1319_v17  ;;  %v1330_v19 = vadd.f32 %v1917_v18, %v2515_v40 }
 0x1e1   :  { %v1321_v20 = vpop.f32.mrf.mxu1 }
 0x1e2   :  { %1480 = vst.msk [vmem:[%s2843_s6 + $0x118] sm:$0xff] %vm269_vm2, %v1330_v19  ;;  %v1322_v21 = vadd.f32 %v2515_v40, %v1321_v20 }
 0x1e3   :  { %v1920_v22 = vpop.f32.mrf.mxu1 }
 0x1e4   :  { %1478 = vst.msk [vmem:[%s2843_s6 + $0x108] sm:$0xff] %vm269_vm2, %v1322_v21  ;;  %v1343_v23 = vadd.f32 %v1920_v22, %v2515_v40 }
 0x1e5   :  { %v1334_v24 = vpop.f32.mrf.mxu1 }
 0x1e6   :  { %1483 = vst.msk [vmem:[%s2843_s6 + $0x130] sm:$0xff] %vm269_vm2, %v1343_v23  ;;  %v1335_v25 = vadd.f32 %v2515_v40, %v1334_v24 }
 0x1e7   :  { %v1921_v26 = vpop.f32.mrf.mxu1 }
 0x1e8   :  { %1481 = vst.msk [vmem:[%s2843_s6 + $0x120] sm:$0xff] %vm269_vm2, %v1335_v25  ;;  %v1346_v27 = vadd.f32 %v1921_v26, %v2515_v40 }
 0x1e9   :  { %v1337_v28 = vpop.f32.mrf.mxu1 }
 0x1ea   :  { %1484 = vst.msk [vmem:[%s2843_s6 + $0x138] sm:$0xff] %vm269_vm2, %v1346_v27  ;;  %v1338_v29 = vadd.f32 %v2515_v40, %v1337_v28 }
 0x1eb   :  { %v1924_v30 = vpop.f32.mrf.mxu1 }
 0x1ec   :  { %1482 = vst.msk [vmem:[%s2843_s6 + $0x128] sm:$0xff] %vm269_vm2, %v1338_v29  ;;  %v1359_v31 = vadd.f32 %v1924_v30, %v2515_v40 }
 0x1ed   :  { %v1350_v32 = vpop.f32.mrf.mxu1 }
 0x1ee   :  { %1487 = vst.msk [vmem:[%s2843_s6 + $0x150] sm:$0xff] %vm269_vm2, %v1359_v31  ;;  %v1351_v33 = vadd.f32 %v2515_v40, %v1350_v32 }
 0x1ef   :  { %v1925_v34 = vpop.f32.mrf.mxu1 }
 0x1f0   :  { %1485 = vst.msk [vmem:[%s2843_s6 + $0x140] sm:$0xff] %vm269_vm2, %v1351_v33  ;;  %v1362_v35 = vadd.f32 %v1925_v34, %v2515_v40 }
 0x1f1   :  { %v1353_v36 = vpop.f32.mrf.mxu1 }
 0x1f2   :  { %1488 = vst.msk [vmem:[%s2843_s6 + $0x158] sm:$0xff] %vm269_vm2, %v1362_v35  ;;  %v1354_v37 = vadd.f32 %v2515_v40, %v1353_v36 }
 0x1f3   :  { %v1928_v38 = vpop.f32.mrf.mxu1 }
 0x1f4   :  { %1486 = vst.msk [vmem:[%s2843_s6 + $0x148] sm:$0xff] %vm269_vm2, %v1354_v37  ;;  %v1375_v39 = vadd.f32 %v1928_v38, %v2515_v40 }
 0x1f5   :  { %v1366_v41 = vpop.f32.mrf.mxu1 }
 0x1f6   :  { %1491 = vst.msk [vmem:[%s2843_s6 + $0x170] sm:$0xff] %vm269_vm2, %v1375_v39  ;;  %v1367_v42 = vadd.f32 %v2515_v40, %v1366_v41 }
 0x1f7   :  { %v1929_v43 = vpop.f32.mrf.mxu1 }
 0x1f8   :  { %1489 = vst.msk [vmem:[%s2843_s6 + $0x160] sm:$0xff] %vm269_vm2, %v1367_v42  ;;  %v1378_v44 = vadd.f32 %v1929_v43, %v2515_v40 }
 0x1f9   :  { %v1369_v45 = vpop.f32.mrf.mxu1 }
 0x1fa   :  { %1492 = vst.msk [vmem:[%s2843_s6 + $0x178] sm:$0xff] %vm269_vm2, %v1378_v44  ;;  %v1370_v46 = vadd.f32 %v2515_v40, %v1369_v45 }
 0x1fb   :  { %v1932_v47 = vpop.f32.mrf.mxu1 }
 0x1fc   :  { %1490 = vst.msk [vmem:[%s2843_s6 + $0x168] sm:$0xff] %vm269_vm2, %v1370_v46  ;;  %v1391_v48 = vadd.f32 %v1932_v47, %v2515_v40 }
 0x1fd   :  { %v1382_v49 = vpop.f32.mrf.mxu1 }
 0x1fe   :  { %1495 = vst.msk [vmem:[%s2843_s6 + $0x190] sm:$0xff] %vm269_vm2, %v1391_v48  ;;  %v1383_v50 = vadd.f32 %v2515_v40, %v1382_v49 }
 0x1ff   :  { %v1933_v51 = vpop.f32.mrf.mxu1 }
 0x200   :  { %1493 = vst.msk [vmem:[%s2843_s6 + $0x180] sm:$0xff] %vm269_vm2, %v1383_v50  ;;  %v1394_v52 = vadd.f32 %v1933_v51, %v2515_v40 }
 0x201   :  { %v1385_v53 = vpop.f32.mrf.mxu1 }
 0x202   :  { %1496 = vst.msk [vmem:[%s2843_s6 + $0x198] sm:$0xff] %vm269_vm2, %v1394_v52  ;;  %v1386_v54 = vadd.f32 %v2515_v40, %v1385_v53 }
 0x203   :  { %v1936_v55 = vpop.f32.mrf.mxu1 }
 0x204   :  { %1494 = vst.msk [vmem:[%s2843_s6 + $0x188] sm:$0xff] %vm269_vm2, %v1386_v54  ;;  %v1407_v56 = vadd.f32 %v1936_v55, %v2515_v40 }
 0x205   :  { %v1398_v57 = vpop.f32.mrf.mxu1 }
 0x206   :  { %1499 = vst.msk [vmem:[%s2843_s6 + $0x1b0] sm:$0xff] %vm269_vm2, %v1407_v56  ;;  %v1399_v58 = vadd.f32 %v2515_v40, %v1398_v57 }
 0x207   :  { %v1937_v59 = vpop.f32.mrf.mxu1 }
 0x208   :  { %1497 = vst.msk [vmem:[%s2843_s6 + $0x1a0] sm:$0xff] %vm269_vm2, %v1399_v58  ;;  %v1410_v60 = vadd.f32 %v1937_v59, %v2515_v40 }
 0x209   :  { %v1401_v61 = vpop.f32.mrf.mxu1 }
 0x20a   :  { %1500 = vst.msk [vmem:[%s2843_s6 + $0x1b8] sm:$0xff] %vm269_vm2, %v1410_v60  ;;  %v1402_v62 = vadd.f32 %v2515_v40, %v1401_v61 }
 0x20b   :  { %v1940_v63 = vpop.f32.mrf.mxu1 }
 0x20c   :  { %1498 = vst.msk [vmem:[%s2843_s6 + $0x1a8] sm:$0xff] %vm269_vm2, %v1402_v62  ;;  %v1423_v0 = vadd.f32 %v1940_v63, %v2515_v40 }
 0x20d   :  { %v1414_v1 = vpop.f32.mrf.mxu1 }
 0x20e   :  { %1503 = vst.msk [vmem:[%s2843_s6 + $0x1d0] sm:$0xff] %vm269_vm2, %v1423_v0  ;;  %v1415_v2 = vadd.f32 %v2515_v40, %v1414_v1 }
 0x20f   :  { %v1941_v3 = vpop.f32.mrf.mxu1 }
 0x210   :  { %1501 = vst.msk [vmem:[%s2843_s6 + $0x1c0] sm:$0xff] %vm269_vm2, %v1415_v2  ;;  %v1426_v4 = vadd.f32 %v1941_v3, %v2515_v40 }
 0x211   :  { %v1417_v5 = vpop.f32.mrf.mxu1 }
 0x212   :  { %1504 = vst.msk [vmem:[%s2843_s6 + $0x1d8] sm:$0xff] %vm269_vm2, %v1426_v4  ;;  %v1418_v6 = vadd.f32 %v2515_v40, %v1417_v5 }
 0x213   :  { %v1944_v7 = vpop.f32.mrf.mxu1 }
 0x214   :  { %1502 = vst.msk [vmem:[%s2843_s6 + $0x1c8] sm:$0xff] %vm269_vm2, %v1418_v6  ;;  %v1439_v8 = vadd.f32 %v1944_v7, %v2515_v40 }
 0x215   :  { %v1430_v9 = vpop.f32.mrf.mxu1 }
 0x216   :  { %1507 = vst.msk [vmem:[%s2843_s6 + $0x1f0] sm:$0xff] %vm269_vm2, %v1439_v8  ;;  %v1431_v10 = vadd.f32 %v2515_v40, %v1430_v9 }
 0x217   :  { %v1945_v11 = vpop.f32.mrf.mxu1 }
 0x218   :  { %1505 = vst.msk [vmem:[%s2843_s6 + $0x1e0] sm:$0xff] %vm269_vm2, %v1431_v10  ;;  %v1442_v12 = vadd.f32 %v1945_v11, %v2515_v40 }
 0x219   :  { %v1433_v13 = vpop.f32.mrf.mxu1 }
 0x21a   :  { %1508 = vst.msk [vmem:[%s2843_s6 + $0x1f8] sm:$0xff] %vm269_vm2, %v1442_v12  ;;  %v1434_v14 = vadd.f32 %v2515_v40, %v1433_v13 }
 0x21c   :  { %1506 = vst.msk [vmem:[%s2843_s6 + $0x1e8] sm:$0xff] %vm269_vm2, %v1434_v14 }

// kernel: e3rf_forward.6
= control target key start
LH: loop header
LB: loop body
LE: loop exit
PB: predicated region body
PF: predicated region fallthrough
CT: control target
= control target key end

     0   :  { %vm88_vm0 = vcmask 1043456   ;;  %vm81_vm1 = vcmask 588800   ;;  %s434_s0 = inlined_call_operand.vmem [shape: bf16[32,72], index: 0, kind: input, shape index: {}]   ;;  %s435_s1 = inlined_call_operand.vmem [shape: bf16[72,8], index: 1, kind: input, shape index: {}]   ;;  %s436_s2 = inlined_call_operand.vmem [shape: f32[1,8], index: 2, kind: input, shape index: {}]   ;;  %s437_s3 = inlined_call_operand.vmem [shape: bf16[8,27], index: 3, kind: input, shape index: {}]   ;;  %s438_s4 = inlined_call_operand.vmem [shape: f32[1,27], index: 4, kind: input, shape index: {}]   ;;  %s439_s5 = inlined_call_operand.hbm [shape: bf16[32,8], index: 5, kind: output, shape index: {0}]   ;;  %s440_s6 = inlined_call_operand.vmem [shape: f32[32,27], index: 6, kind: output, shape index: {1}]  }
   0x1   :  { %v314_v0 = vld [vmem:[%s435_s1 + $0x20] ss:$0 sps:$4 sm:$0xff]   ;;  %v315_v1 = vld [vmem:[%s435_s1 + $0x18] sm:$0xff]   ;;  %v316_v3 = vld [vmem:[%s435_s1 + $0x10] sm:$0xff]  }
   0x2   :  { %309 = vmatprep.subr.msk.bf16.mxu0 %vm88_vm0, %v314_v0  ;;  %v90_v2 = vsel %vm88_vm0, %v314_v0, 0  ;;  %v319_v4 = vld [vmem:[%s434_s0] sm:$0xff]  }
   0x3   :  { %290 = vmatpush3.bf16.msra.mxu0 %v90_v2 }
   0x4   :  { %291 = vmatprep.subr.bf16.mxu0 %v315_v1 }
   0x5   :  { %12 = vsyncpa [#allocation3], 0  ;;  %299 = vmatprep.mubr.msk.bf16.mxu0 %vm81_vm1, %v319_v4  ;;  %v317_v5 = vld [vmem:[%s435_s1 + $0x8] sm:$0xff]   ;;  %v318_v6 = vld [vmem:[%s435_s1] sm:$0xff]   ;;  %vm161_vm2 = vcmask 60416   ;;  %vm174_vm3 = vcmask 64512  }
   0x6   :  { %v320_v7 = vld [vmem:[%s434_s0 + $0x8] sm:$0xff]   ;;  %v166_v8 = vld [vmem:[%s437_s3] sm:$0xf]  ;;  %s343_s0 = smov [#allocation2]  }
   0x7   :  { %292 = vmatpush3.bf16.msra.mxu0 %v315_v1  ;;  %310 = vmatprep.subr.msk.bf16.mxu1 %vm88_vm0, %v166_v8  ;;  %v182_v9 = vsel %vm88_vm0, %v166_v8, 0  ;;  %v258_v10 = vld [vmem:[%s436_s2] ss:$0 sm:$0xff]  ;;  %s243_s1 = sshll.u32 %s343_s0, 4  ;;  %s244_s1 = int_to_ptr.vmem [resolvable:$true] %s243_s1 }
   0x8   :  { %293 = vmatprep.subr.bf16.mxu0 %v316_v3  ;;  %304 = vmatpush3.bf16.msra.mxu1 %v182_v9  ;;  %s321_s2 = scalar_lea.vmem %s244_s1, 256  ;;  %p326_p1 = scmp.lt.s32.totalorder %s244_s1, %s244_s1 }
   0x9   :  { %p322_p0 = scmp.ne.s32.totalorder %s244_s1, %s321_s2  ;;  %p327_p2 = scmp.lt.s32.totalorder %s321_s2, %s321_s2 }
   0xb   :  { %294 = vmatpush3.bf16.msra.mxu0 %v316_v3  ;;  %p328_p3 = por %p327_p2, %p326_p1 }
   0xc   :  { %295 = vmatprep.subr.bf16.mxu0 %v317_v5 }
   0xd   :  { %p329_p4 = pnand %p328_p3, %p322_p0 }
   0xf   :  { %296 = vmatpush3.bf16.msra.mxu0 %v317_v5 }
  0x10   :  { %297 = vmatprep.subr.bf16.mxu0 %v318_v6 }
  0x13   :  { %298 = vmatpush3.bf16.msra.mxu0 %v318_v6 }
  0x16   :  { %300 = vmatmul.mubr.msk.bf16.vlgmr.msra.gmra.mxu0 %vm81_vm1, %v320_v7 }
  0xd6   :  { %v301_v11 = vpop.f32.mrf.mxu0 }
  0xd7   :  { %v135_v12 = vadd.f32 %v301_v11, %v258_v10 }
  0xd8   :  { %v126_v13 = vpop.f32.mrf.mxu0 }
  0xd9   :  { %v143_v14 = vmax.f32 %v135_v12, 0.0  ;;  %v127_v15 = vadd.f32 %v258_v10, %v126_v13 }
  0xda   :  { %v302_v16 = vpop.f32.mrf.mxu0 }
  0xdb   :  { %v277_v17 = vpack.c.bf16 %v143_v14, %v143_v14  ;;  %v141_v18 = vmax.f32 %v127_v15, 0.0  ;;  %v138_v19 = vadd.f32 %v302_v16, %v258_v10 }
  0xdc   :  { %v129_v20 = vpop.f32.mrf.mxu0 }
  0xdd   :  { %164 = vst.msk [vmem:[#allocation2 + $0x8] sm:$0xf] %vm161_vm2, %v277_v17  ;;  %v275_v21 = vpack.c.bf16 %v141_v18, %v141_v18  ;;  %v144_v22 = vmax.f32 %v138_v19, 0.0  ;;  %v130_v23 = vadd.f32 %v258_v10, %v129_v20 }
  0xdf   :  { %162 = vst.msk [vmem:[#allocation2] sm:$0xf] %vm161_vm2, %v275_v21  ;;  %v278_v24 = vpack.c.bf16 %v144_v22, %v144_v22  ;;  %v142_v25 = vmax.f32 %v130_v23, 0.0  ;;  %v146_v28 = vpack.c.bf16 %v144_v22, %v143_v14 }
  0xe1   :  { %165 = vst.msk [vmem:[#allocation2 + $0xc] sm:$0xf] %vm161_vm2, %v278_v24  ;;  %v276_v26 = vpack.c.bf16 %v142_v25, %v142_v25  ;;  %v145_v27 = vpack.c.bf16 %v142_v25, %v141_v18 }
  0xe3   :  { %163 = vst.msk [vmem:[#allocation2 + $0x4] sm:$0xf] %vm161_vm2, %v276_v26  ;;  %305 = vmatprep.mubr.msk.bf16.mxu1 %vm174_vm3, %v145_v27 }
  0xe4   :  { %306 = vmatmul.mubr.msk.bf16.vlgmr.msra.gmra.mxu1 %vm174_vm3, %v146_v28 }
  0xe5   :  { %332 = shalt.err (!%p329_p4)
}
  0xe6   :  { %s344_s3 = smov 64   ;;  %s345_s15 = smov 4   ;;  %v272_v29 = vld [vmem:[%s438_s4] ss:$0 sm:$0xff]  ;;  %vm233_vm4 = vcmask 220160  }
  0xe7   :  { %249 = dma.vmem_to_hbm [thread:$0]  %s244_s1, 256, %s439_s5, [#allocation3], %s344_s3, %s344_s3, %s345_s15  }
 0x1a4   :  { %v307_v30 = vpop.f32.mrf.mxu1 }
 0x1a5   :  { %v227_v31 = vadd.f32 %v307_v30, %v272_v29 }
 0x1a6   :  { %v218_v32 = vpop.f32.mrf.mxu1 }
 0x1a7   :  { %236 = vst.msk [vmem:[%s440_s6 + $0x10] sm:$0xff] %vm233_vm4, %v227_v31  ;;  %v219_v33 = vadd.f32 %v272_v29, %v218_v32 }
 0x1a8   :  { %v308_v34 = vpop.f32.mrf.mxu1 }
 0x1a9   :  { %234 = vst.msk [vmem:[%s440_s6] sm:$0xff] %vm233_vm4, %v219_v33  ;;  %v230_v35 = vadd.f32 %v308_v34, %v272_v29 }
 0x1aa   :  { %v221_v36 = vpop.f32.mrf.mxu1 }
 0x1ab   :  { %237 = vst.msk [vmem:[%s440_s6 + $0x18] sm:$0xff] %vm233_vm4, %v230_v35  ;;  %v222_v37 = vadd.f32 %v272_v29, %v221_v36 }
 0x1ad   :  { %235 = vst.msk [vmem:[%s440_s6 + $0x8] sm:$0xff] %vm233_vm4, %v222_v37 }
 0x1ae   :  { %341 = dma.done.wait [#allocation3], 256  }
 0x1af   :  { %342 = vsyncadd [#allocation3], 4294967040 }
 0x1b0   :  { %257 = vsyncpa [#allocation3], 1 }

// kernel: e3rf_forward.7
= control target key start
LH: loop header
LB: loop body
LE: loop exit
PB: predicated region body
PF: predicated region fallthrough
CT: control target
= control target key end

     0   :  { %s1093_s1 = inlined_call_operand.vmem [shape: f32[96,256], index: 1, kind: input, shape index: {}]   ;;  %s1094_s0 = inlined_call_operand.vmem [shape: f32[96,256], index: 0, kind: input, shape index: {}]   ;;  %s1095_s2 = inlined_call_operand.vmem [shape: f32[1,128], index: 2, kind: output, shape index: {}]  }
   0x1   :  { %v664_v0 = vld [vmem:[%s1093_s1] sm:$0xff]  ;;  %v669_v1 = vld [vmem:[%s1093_s1 + $0x8] sm:$0xff]  ;;  %v687_v6 = vld [vmem:[%s1093_s1 + $0x10] sm:$0xff] }
   0x2   :  { %v674_v2 = vld [vmem:[%s1094_s0] sm:$0xff]  ;;  %v395_v3 = vadd.f32 %v669_v1, %v664_v0  ;;  %v681_v4 = vld [vmem:[%s1094_s0 + $0x8] sm:$0xff]  ;;  %v692_v7 = vld [vmem:[%s1093_s1 + $0x18] sm:$0xff] }
   0x3   :  { %v59_v5 = vand.u32 2147483647, %v674_v2  ;;  %v60_v8 = vand.u32 2147483647, %v681_v4  ;;  %v398_v10 = vadd.f32 %v692_v7, %v687_v6  ;;  %v700_v12 = vld [vmem:[%s1093_s1 + $0x20] sm:$0xff]  ;;  %v705_v13 = vld [vmem:[%s1093_s1 + $0x28] sm:$0xff] }
   0x4   :  { %396 = vadd.xlane.f32.xlu1 %v395_v3  ;;  %v710_v15 = vld [vmem:[%s1094_s0 + $0x10] sm:$0xff]  ;;  %v715_v16 = vld [vmem:[%s1094_s0 + $0x18] sm:$0xff]  ;;  %v401_v20 = vadd.f32 %v705_v13, %v700_v12  ;;  %v734_v23 = vld [vmem:[%s1094_s0 + $0x20] sm:$0xff]  ;;  %vm155_vm0 = vcmp.ge.f32.partialorder %v674_v2, 0.0  ;;  %vm156_vm1 = vcmp.ge.f32.partialorder %v681_v4, 0.0 }
   0x5   :  { %v83_v9 = vsub.f32 0.0, %v59_v5  ;;  %v84_v11 = vsub.f32 0.0, %v60_v8  ;;  %v61_v18 = vand.u32 2147483647, %v710_v15  ;;  %v62_v19 = vand.u32 2147483647, %v715_v16 }
   0x6   :  { %v724_v21 = vld [vmem:[%s1093_s1 + $0x30] sm:$0xff]  ;;  %v729_v22 = vld [vmem:[%s1093_s1 + $0x38] sm:$0xff]  ;;  %v739_v26 = vld [vmem:[%s1094_s0 + $0x28] sm:$0xff]  ;;  %v63_v27 = vand.u32 2147483647, %v734_v23  ;;  %vm157_vm2 = vcmp.ge.f32.partialorder %v710_v15, 0.0 }
   0x7   :  { %v107_v14 = vmul.f32 1.442695, %v83_v9  ;;  %v109_v17 = vmul.f32 1.442695, %v84_v11  ;;  %v85_v24 = vsub.f32 0.0, %v61_v18  ;;  %v86_v25 = vsub.f32 0.0, %v62_v19 }
   0x8   :  { %399 = vadd.xlane.f32.xlu1 %v398_v10  ;;  %v64_v28 = vand.u32 2147483647, %v739_v26  ;;  %v404_v29 = vadd.f32 %v729_v22, %v724_v21  ;;  %v748_v32 = vld [vmem:[%s1094_s0 + $0x30] sm:$0xff]  ;;  %v753_v33 = vld [vmem:[%s1094_s0 + $0x38] sm:$0xff]  ;;  %v87_v34 = vsub.f32 0.0, %v63_v27  ;;  %v760_v38 = vld [vmem:[%s1093_s1 + $0x40] sm:$0xff] }
   0x9   :  { %526 = vpow2.f32 %v107_v14  ;;  %v111_v30 = vmul.f32 1.442695, %v85_v24  ;;  %v113_v31 = vmul.f32 1.442695, %v86_v25  ;;  %v65_v36 = vand.u32 2147483647, %v748_v32 }
   0xa   :  { %528 = vpow2.f32 %v109_v17  ;;  %v88_v35 = vsub.f32 0.0, %v64_v28  ;;  %v66_v37 = vand.u32 2147483647, %v753_v33  ;;  %v765_v39 = vld [vmem:[%s1093_s1 + $0x48] sm:$0xff]  ;;  %v770_v40 = vld [vmem:[%s1094_s0 + $0x40] sm:$0xff]  ;;  %v782_v48 = vld [vmem:[%s1094_s0 + $0x50] sm:$0xff] }
   0xb   :  { %530 = vpow2.f32 %v111_v30  ;;  %v115_v41 = vmul.f32 1.442695, %v87_v34  ;;  %v89_v43 = vsub.f32 0.0, %v65_v36  ;;  %v775_v44 = vld [vmem:[%s1094_s0 + $0x48] sm:$0xff]  ;;  %v67_v46 = vand.u32 2147483647, %v770_v40 }
   0xc   :  { %402 = vadd.xlane.f32.xlu1 %v401_v20  ;;  %532 = vpow2.f32 %v113_v31  ;;  %v117_v42 = vmul.f32 1.442695, %v88_v35  ;;  %v90_v45 = vsub.f32 0.0, %v66_v37  ;;  %v68_v47 = vand.u32 2147483647, %v775_v44  ;;  %v789_v50 = vld [vmem:[%s1093_s1 + $0x50] sm:$0xff] }
   0xd   :  { %v407_v49 = vadd.f32 %v765_v39, %v760_v38  ;;  %v794_v51 = vld [vmem:[%s1093_s1 + $0x58] sm:$0xff]  ;;  %534 = vpow2.f32 %v115_v41  ;;  %v119_v52 = vmul.f32 1.442695, %v89_v43  ;;  %v91_v55 = vsub.f32 0.0, %v67_v46  ;;  %v804_v57 = vld [vmem:[%s1094_s0 + $0xa0] sm:$0xff]  ;;  %v809_v58 = vld [vmem:[%s1094_s0 + $0xa8] sm:$0xff] }
   0xe   :  { %v799_v53 = vld [vmem:[%s1094_s0 + $0x58] sm:$0xff]  ;;  %536 = vpow2.f32 %v117_v42  ;;  %v121_v54 = vmul.f32 1.442695, %v90_v45  ;;  %v92_v56 = vsub.f32 0.0, %v68_v47  ;;  %v69_v59 = vand.u32 2147483647, %v782_v48 }
   0xf   :  { %538 = vpow2.f32 %v119_v52  ;;  %v70_v60 = vand.u32 2147483647, %v799_v53  ;;  %v410_v61 = vadd.f32 %v794_v51, %v789_v50  ;;  %v123_v62 = vmul.f32 1.442695, %v91_v55  ;;  %v822_v11 = vld [vmem:[%s1093_s1 + $0x60] sm:$0xff]  ;;  %v827_v14 = vld [vmem:[%s1093_s1 + $0x68] sm:$0xff] }
  0x10   :  { %405 = vadd.xlane.f32.xlu1 %v404_v29  ;;  %540 = vpow2.f32 %v121_v54  ;;  %v125_v63 = vmul.f32 1.442695, %v92_v56  ;;  %v93_v3 = vsub.f32 0.0, %v69_v59  ;;  %v79_v8 = vand.u32 2147483647, %v804_v57  ;;  %v832_v17 = vld [vmem:[%s1094_s0 + $0x60] sm:$0xff] }
  0x11   :  { %v94_v5 = vsub.f32 0.0, %v70_v60  ;;  %v80_v9 = vand.u32 2147483647, %v809_v58  ;;  %542 = vpow2.f32 %v123_v62  ;;  %v841_v25 = vld [vmem:[%s1093_s1 + $0x70] sm:$0xff]  ;;  %v846_v27 = vld [vmem:[%s1093_s1 + $0x78] sm:$0xff]  ;;  %v413_v30 = vadd.f32 %v827_v14, %v822_v11  ;;  %v853_v34 = vld [vmem:[%s1094_s0 + $0x68] sm:$0xff] }
  0x12   :  { %544 = vpow2.f32 %v125_v63  ;;  %v127_v20 = vmul.f32 1.442695, %v93_v3  ;;  %v103_v29 = vsub.f32 0.0, %v79_v8  ;;  %v71_v35 = vand.u32 2147483647, %v832_v17  ;;  %v865_v42 = vld [vmem:[%s1093_s1 + $0x80] sm:$0xff] }
  0x13   :  { %v129_v28 = vmul.f32 1.442695, %v94_v5  ;;  %v104_v31 = vsub.f32 0.0, %v80_v9  ;;  %vm158_vm3 = vcmp.ge.f32.partialorder %v715_v16, 0.0  ;;  %v416_v41 = vadd.f32 %v846_v27, %v841_v25  ;;  %1098 = vst [vmem:[#allocation2_spill] sm:$0xff] %v865_v42  ;;  %v870_v43 = vld [vmem:[%s1093_s1 + $0x88] sm:$0xff] }
  0x14   :  { %408 = vadd.xlane.f32.xlu1 %v407_v49  ;;  %v147_v36 = vmul.f32 1.442695, %v103_v29  ;;  %1099 = vst [vmem:[#allocation3_spill] sm:$0xff] %v870_v43  ;;  %v72_v49 = vand.u32 2147483647, %v853_v34  ;;  %v876_v52 = vld [vmem:[%s1094_s0 + $0x70] sm:$0xff]  ;;  %v419_v60 = vadd.f32 %v870_v43, %v865_v42 }
  0x15   :  { %v149_v47 = vmul.f32 1.442695, %v104_v31  ;;  %vm159_vm4 = vcmp.ge.f32.partialorder %v734_v23, 0.0  ;;  %v95_v55 = vsub.f32 0.0, %v71_v35  ;;  %v882_v56 = vld [vmem:[%s1094_s0 + $0x78] sm:$0xff]  ;;  %vm160_vm5 = vcmp.ge.f32.partialorder %v739_v26, 0.0 }
  0x16   :  { %v817_v10 = vpop.eup %526  ;;  %vm161_vm6 = vcmp.ge.f32.partialorder %v748_v32, 0.0  ;;  %v896_v62 = vld [vmem:[%s1093_s1 + $0x98] sm:$0xff]  ;;  %vm162_vm7 = vcmp.ge.f32.partialorder %v753_v33, 0.0  ;;  %v73_v5 = vand.u32 2147483647, %v876_v52  ;;  %vm163_vm8 = vcmp.ge.f32.partialorder %v770_v40, 0.0 }
  0x17   :  { %v834_v18 = vpop.eup %528  ;;  %v203_v19 = vadd.f32 1.0, %v817_v10  ;;  %vm164_vm9 = vcmp.ge.f32.partialorder %v775_v44, 0.0  ;;  %v931_v15 = vld [vmem:[%s1094_s0 + $0x88] sm:$0xff]  ;;  %vm165_vm10 = vcmp.ge.f32.partialorder %v782_v48, 0.0  ;;  %vm166_vm11 = vcmp.ge.f32.partialorder %v799_v53, 0.0  ;;  %v1005_v48 = vld [vmem:[%s1094_s0 + $0xb8] sm:$0xff] }
  0x18   :  { %v204_v24 = vadd.f32 1.0, %v834_v18  ;;  %411 = vadd.xlane.f32.xlu1 %v410_v61  ;;  %v531_v37 = vpop.eup %530  ;;  %v891_v61 = vld [vmem:[%s1093_s1 + $0x90] sm:$0xff]  ;;  %v76_v33 = vand.u32 2147483647, %v931_v15  ;;  %vm175_vm12 = vcmp.ge.f32.partialorder %v804_v57, 0.0  ;;  %vm176_vm13 = vcmp.ge.f32.partialorder %v809_v58, 0.0 }
  0x19   :  { %546 = vrcp.f32 %v203_v19  ;;  %v533_v45 = vpop.eup %532  ;;  %v205_v46 = vadd.f32 1.0, %v531_v37  ;;  %v96_v19 = vsub.f32 0.0, %v72_v49  ;;  %v422_v29 = vadd.f32 %v896_v62, %v891_v61 }
  0x1a   :  { %548 = vrcp.f32 %v204_v24  ;;  %v206_v54 = vadd.f32 1.0, %v533_v45  ;;  %v535_v59 = vpop.eup %534  ;;  %v181_v2 = vsel %vm157_vm2, 1.0, %v531_v37  ;;  %vm167_vm14 = vcmp.ge.f32.partialorder %v832_v17, 0.0 }
  0x1b   :  { %550 = vpow2.f32 %v127_v20  ;;  %v537_v63 = vpop.eup %536  ;;  %v207_v3 = vadd.f32 1.0, %v535_v59  ;;  %v74_v20 = vand.u32 2147483647, %v882_v56  ;;  %vm168_vm15 = vcmp.ge.f32.partialorder %v853_v34, 0.0 }
  0x1c   :  { %552 = vpow2.f32 %v129_v28  ;;  %414 = vadd.xlane.f32.xlu1 %v413_v30  ;;  %v539_v8 = vpop.eup %538  ;;  %v208_v9 = vadd.f32 1.0, %v537_v63  ;;  %v131_v30 = vmul.f32 1.442695, %v95_v55 }
  0x1d   :  { %554 = vpow2.f32 %v147_v36  ;;  %v541_v24 = vpop.eup %540  ;;  %v209_v28 = vadd.f32 1.0, %v539_v8  ;;  %v179_v36 = vsel %vm155_vm0, 1.0, %v817_v10  ;;  %v98_v55 = vsub.f32 0.0, %v74_v20 }
  0x1e   :  { %556 = vrcp.f32 %v205_v46  ;;  %v210_v31 = vadd.f32 1.0, %v541_v24  ;;  %v543_v35 = vpop.eup %542  ;;  %v97_v46 = vsub.f32 0.0, %v73_v5  ;;  %v182_v10 = vsel %vm158_vm3, 1.0, %v533_v45 }
  0x1f   :  { %558 = vrcp.f32 %v206_v54  ;;  %v211_v49 = vadd.f32 1.0, %v543_v35  ;;  %v133_v54 = vmul.f32 1.442695, %v96_v19  ;;  %v183_v5 = vsel %vm159_vm4, 1.0, %v535_v59 }
  0x20   :  { %560 = vpow2.f32 %v149_v47  ;;  %417 = vadd.xlane.f32.xlu1 %v416_v41  ;;  %v180_v41 = vsel %vm156_vm1, 1.0, %v834_v18  ;;  %v545_v47 = vpop.eup %544  ;;  %v926_v19 = vsel %vm161_vm6, 1.0, %v539_v8  ;;  %v135_v45 = vmul.f32 1.442695, %v97_v46 }
  0x21   :  { %562 = vrcp.f32 %v207_v3  ;;  %v914_v3 = vld [vmem:[%s1094_s0 + $0x80] sm:$0xff]  ;;  %v212_v4 = vadd.f32 1.0, %v545_v47  ;;  %v186_v32 = vsel %vm162_vm7, 1.0, %v541_v24  ;;  %vm169_vm0 = vcmp.ge.f32.partialorder %v876_v52, 0.0 }
  0x22   :  { %564 = vrcp.f32 %v208_v9  ;;  %v184_v9 = vsel %vm160_vm5, 1.0, %v537_v63  ;;  %v75_v23 = vand.u32 2147483647, %v914_v3  ;;  %v941_v63 = vld [vmem:[%s1094_s0 + $0x90] sm:$0xff]  ;;  %vm170_vm1 = vcmp.ge.f32.partialorder %v882_v56, 0.0 }
  0x23   :  { %566 = vrcp.f32 %v209_v28  ;;  %vm171_vm2 = vcmp.ge.f32.partialorder %v914_v3, 0.0  ;;  %vm172_vm3 = vcmp.ge.f32.partialorder %v931_v15, 0.0  ;;  %vm173_vm4 = vcmp.ge.f32.partialorder %v941_v63, 0.0 }
  0x24   :  { %568 = vrcp.f32 %v210_v31  ;;  %420 = vadd.xlane.f32.xlu1 %v419_v60  ;;  %v137_v60 = vmul.f32 1.442695, %v98_v55  ;;  %vm178_vm7 = vcmp.ge.f32.partialorder %v1005_v48, 0.0 }
  0x25   :  { %570 = vpow2.f32 %v131_v30 }
  0x26   :  { %v547_v18 = vpop.eup %546  ;;  %572 = vrcp.f32 %v211_v49  ;;  %v99_v49 = vsub.f32 0.0, %v75_v23  ;;  %v100_v23 = vsub.f32 0.0, %v76_v33 }
  0x27   :  { %v549_v16 = vpop.eup %548  ;;  %v251_v37 = vmul.f32 %v547_v18, %v179_v36  ;;  %574 = vrcp.f32 %v212_v4 }
  0x28   :  { %v934_v59 = vpop.eup %550  ;;  %v252_v26 = vmul.f32 %v549_v16, %v180_v41  ;;  %576 = vpow2.f32 %v133_v54  ;;  %423 = vadd.xlane.f32.xlu1 %v422_v29  ;;  %v187_v41 = vsel %vm163_vm8, 1.0, %v543_v35  ;;  %v960_v54 = vld [vmem:[%s1094_s0 + $0x98] sm:$0xff]  ;;  %v139_v33 = vmul.f32 1.442695, %v99_v49 }
  0x29   :  { %v943_v8 = vpop.eup %552  ;;  %v275_v20 = vmul.f32 %v251_v37, %v664_v0  ;;  %v335_v28 = vmul.f32 %v251_v37, %v251_v37  ;;  %v213_v30 = vadd.f32 1.0, %v934_v59  ;;  %v188_v37 = vsel %vm164_vm9, 1.0, %v545_v47 }
  0x2a   :  { %v949_v24 = vpop.eup %554  ;;  %v276_v31 = vmul.f32 %v252_v26, %v669_v1  ;;  %v336_v36 = vmul.f32 %v252_v26, %v252_v26  ;;  %v214_v0 = vadd.f32 1.0, %v943_v8  ;;  %v77_v1 = vand.u32 2147483647, %v941_v63 }
  0x2b   :  { %v557_v46 = vpop.eup %556  ;;  %578 = vrcp.f32 %v213_v30  ;;  %v223_v29 = vadd.f32 1.0, %v949_v24  ;;  %v141_v49 = vmul.f32 1.442695, %v100_v23  ;;  %vm174_vm5 = vcmp.ge.f32.partialorder %v960_v54, 0.0 }
  0x2c   :  { %v559_v55 = vpop.eup %558  ;;  %v359_v4 = vadd.f32 %v336_v36, %v335_v28  ;;  %v253_v40 = vmul.f32 %v557_v46, %v181_v2  ;;  %580 = vrcp.f32 %v214_v0  ;;  %v963_v35 = vadd.f32 %v276_v31, %v275_v20 }
  0x2d   :  { %v965_v18 = vpop.eup %560  ;;  %v254_v16 = vmul.f32 %v559_v55, %v182_v10  ;;  %582 = vrcp.f32 %v223_v29  ;;  %v78_v20 = vand.u32 2147483647, %v960_v54  ;;  %v101_v0 = vsub.f32 0.0, %v77_v1 }
  0x2e   :  { %1100 = vst [vmem:[#allocation4_spill] sm:$0xff] %v963_v35  ;;  %v563_v26 = vpop.eup %562  ;;  %360 = vadd.xlane.f32.xlu0 %v359_v4  ;;  %v337_v30 = vmul.f32 %v253_v40, %v253_v40  ;;  %v277_v43 = vmul.f32 %v253_v40, %v687_v6  ;;  %v224_v2 = vadd.f32 1.0, %v965_v18  ;;  %584 = vpow2.f32 %v135_v45 }
  0x2f   :  { %v565_v28 = vpop.eup %564  ;;  %v338_v10 = vmul.f32 %v254_v16, %v254_v16  ;;  %v255_v31 = vmul.f32 %v563_v26, %v183_v5  ;;  %v278_v44 = vmul.f32 %v254_v16, %v692_v7  ;;  %v102_v7 = vsub.f32 0.0, %v78_v20 }
  0x30   :  { %v567_v47 = vpop.eup %566  ;;  %v256_v36 = vmul.f32 %v565_v28, %v184_v9  ;;  %586 = vrcp.f32 %v224_v2  ;;  %v190_v2 = vsel %vm166_vm11, 1.0, %v943_v8  ;;  %v199_v28 = vsel %vm175_vm12, 1.0, %v949_v24 }
  0x31   :  { %v569_v46 = vpop.eup %568  ;;  %v362_v29 = vadd.f32 %v338_v10, %v337_v30  ;;  %v339_v6 = vmul.f32 %v255_v31, %v255_v31  ;;  %v976_v55 = vmul.f32 %v567_v47, %v926_v19  ;;  %v302_v4 = vadd.f32 %v278_v44, %v277_v43 }
  0x32   :  { %v978_v40 = vpop.eup %570  ;;  %v340_v42 = vmul.f32 %v256_v36, %v256_v36  ;;  %v980_v35 = vmul.f32 %v569_v46, %v186_v32  ;;  %588 = vpow2.f32 %v137_v60  ;;  %v279_v19 = vmul.f32 %v255_v31, %v700_v12 }
  0x33   :  { %v573_v5 = vpop.eup %572  ;;  %363 = vadd.xlane.f32.xlu0 %v362_v29  ;;  %v341_v9 = vmul.f32 %v976_v55, %v976_v55  ;;  %303 = vadd.xlane.f32.xlu1 %v302_v4  ;;  %v215_v45 = vadd.f32 1.0, %v978_v40  ;;  %v189_v60 = vsel %vm165_vm10, 1.0, %v934_v59  ;;  %v280_v12 = vmul.f32 %v256_v36, %v705_v13 }
  0x34   :  { %v575_v1 = vpop.eup %574  ;;  %v365_v43 = vadd.f32 %v340_v42, %v339_v6  ;;  %v342_v16 = vmul.f32 %v980_v35, %v980_v35  ;;  %v259_v32 = vmul.f32 %v573_v5, %v187_v41  ;;  %v1000_v42 = vld [vmem:[%s1094_s0 + $0xb0] sm:$0xff]  ;;  %v145_v23 = vmul.f32 1.442695, %v102_v7 }
  0x35   :  { %v991_v26 = vpop.eup %576  ;;  %v260_v30 = vmul.f32 %v575_v1, %v188_v37  ;;  %590 = vrcp.f32 %v215_v45  ;;  %v143_v37 = vmul.f32 1.442695, %v101_v0  ;;  %v1008_v13 = vadd.f32 %v280_v12, %v279_v19 }
  0x36   :  { %v368_v59 = vadd.f32 %v342_v16, %v341_v9  ;;  %v216_v41 = vadd.f32 1.0, %v991_v26  ;;  %v343_v53 = vmul.f32 %v259_v32, %v259_v32  ;;  %592 = vpow2.f32 %v139_v33 }
  0x37   :  { %366 = vadd.xlane.f32.xlu0 %v365_v43  ;;  %v344_v8 = vmul.f32 %v260_v30, %v260_v30  ;;  %v81_v10 = vand.u32 2147483647, %v1000_v42  ;;  %v82_v31 = vand.u32 2147483647, %v1005_v48  ;;  %v200_v36 = vsel %vm176_vm13, 1.0, %v965_v18 }
  0x38   :  { %v579_v20 = vpop.eup %578  ;;  %594 = vrcp.f32 %v216_v41  ;;  %v283_v45 = vmul.f32 %v259_v32, %v760_v38  ;;  %v191_v1 = vsel %vm167_vm14, 1.0, %v978_v40  ;;  %v282_v32 = vmul.f32 %v980_v35, %v729_v22  ;;  %v1045_v22 = vld [vmem:[%s1093_s1 + $0xb0] sm:$0xff]  ;;  %v1050_v35 = vld [vmem:[%s1093_s1 + $0xb8] sm:$0xff] }
  0x39   :  { %v581_v44 = vpop.eup %580  ;;  %v261_v47 = vmul.f32 %v579_v20, %v189_v60  ;;  %596 = vpow2.f32 %v141_v49  ;;  %v105_v46 = vsub.f32 0.0, %v81_v10  ;;  %v106_v57 = vsub.f32 0.0, %v82_v31 }
  0x3a   :  { %v583_v33 = vpop.eup %582  ;;  %v262_v0 = vmul.f32 %v581_v44, %v190_v2  ;;  %598 = vpow2.f32 %v143_v37  ;;  %v371_v24 = vadd.f32 %v344_v8, %v343_v53  ;;  %v281_v60 = vmul.f32 %v976_v55, %v724_v21 }
  0x3b   :  { %369 = vadd.xlane.f32.xlu0 %v368_v59  ;;  %v345_v29 = vmul.f32 %v261_v47, %v261_v47  ;;  %v1019_v6 = vmul.f32 %v583_v33, %v199_v28  ;;  %600 = vpow2.f32 %v145_v23  ;;  %v585_v4 = vpop.eup %584  ;;  %v151_v5 = vmul.f32 1.442695, %v105_v46 }
  0x3c   :  { %v346_v7 = vmul.f32 %v262_v0, %v262_v0  ;;  %v153_v9 = vmul.f32 1.442695, %v106_v57  ;;  %v217_v18 = vadd.f32 1.0, %v585_v4  ;;  %v284_v2 = vmul.f32 %v260_v30, %v765_v39 }
  0x3d   :  { %v587_v58 = vpop.eup %586  ;;  %v355_v19 = vmul.f32 %v1019_v6, %v1019_v6  ;;  %602 = vpow2.f32 %v151_v5  ;;  %v192_v21 = vsel %vm168_vm15, 1.0, %v991_v26  ;;  %v308_v30 = vadd.f32 %v282_v32, %v281_v60 }
  0x3e   :  { %v1023_v49 = vmul.f32 %v587_v58, %v200_v36  ;;  %v374_v16 = vadd.f32 %v346_v7, %v345_v29  ;;  %604 = vrcp.f32 %v217_v18  ;;  %v1037_v17 = vadd.f32 %v284_v2, %v283_v45 }
  0x3f   :  { %v589_v43 = vpop.eup %588  ;;  %372 = vadd.xlane.f32.xlu0 %v371_v24  ;;  %606 = vpow2.f32 %v153_v9  ;;  %v428_v20 = vadd.f32 %v1050_v35, %v1045_v22  ;;  %v285_v10 = vmul.f32 %v261_v47, %v789_v50  ;;  %v286_v36 = vmul.f32 %v262_v0, %v794_v51 }
  0x40   :  { %v356_v38 = vmul.f32 %v1023_v49, %v1023_v49  ;;  %v218_v12 = vadd.f32 1.0, %v589_v43  ;;  %v193_v24 = vsel %vm169_vm0, 1.0, %v585_v4  ;;  %vm177_vm6 = vcmp.ge.f32.partialorder %v1000_v42, 0.0 }
  0x41   :  { %v314_v51 = vadd.f32 %v286_v36, %v285_v10  ;;  %v56_v10 = vld [vmem:[%s1093_s1 + $0xa8] sm:$0xff]  ;;  %v1102_v36 = vld [vmem:[#allocation2_spill] sm:$0xff] }
  0x42   :  { %v591_v40 = vpop.eup %590  ;;  %v389_v59 = vadd.f32 %v356_v38, %v355_v19  ;;  %608 = vrcp.f32 %v218_v12 }
  0x43   :  { %375 = vadd.xlane.f32.xlu0 %v374_v16  ;;  %v263_v55 = vmul.f32 %v591_v40, %v191_v1  ;;  %v593_v39 = vpop.eup %592 }
  0x44   :  { %390 = vadd.xlane.f32.xlu1 %v389_v59  ;;  %v219_v37 = vadd.f32 1.0, %v593_v39  ;;  %v195_v45 = vsel %vm171_vm2, 1.0, %v593_v39 }
  0x45   :  { %v595_v41 = vpop.eup %594  ;;  %v347_v34 = vmul.f32 %v263_v55, %v263_v55  ;;  %v287_v26 = vmul.f32 %v263_v55, %v822_v11 }
  0x46   :  { %v597_v23 = vpop.eup %596  ;;  %v264_v53 = vmul.f32 %v595_v41, %v192_v21  ;;  %610 = vrcp.f32 %v219_v37 }
  0x47   :  { %v599_v8 = vpop.eup %598  ;;  %v220_v28 = vadd.f32 1.0, %v597_v23  ;;  %v196_v16 = vsel %vm172_vm3, 1.0, %v597_v23 }
  0x48   :  { %v601_v31 = vpop.eup %600  ;;  %v348_v44 = vmul.f32 %v264_v53, %v264_v53  ;;  %309 = vadd.xlane.f32.xlu1 %v308_v30  ;;  %v221_v33 = vadd.f32 1.0, %v599_v8  ;;  %v288_v46 = vmul.f32 %v264_v53, %v827_v14  ;;  %v194_v14 = vsel %vm170_vm1, 1.0, %v589_v43 }
  0x49   :  { %612 = vrcp.f32 %v220_v28  ;;  %v222_v11 = vadd.f32 1.0, %v601_v31  ;;  %v197_v2 = vsel %vm173_vm4, 1.0, %v599_v8 }
  0x4a   :  { %v377_v57 = vadd.f32 %v348_v44, %v347_v34  ;;  %614 = vrcp.f32 %v221_v33  ;;  %v1062_v29 = vadd.f32 %v288_v46, %v287_v26  ;;  %v603_v50 = vpop.eup %602  ;;  %v1103_v46 = vld [vmem:[#allocation3_spill] sm:$0xff] }
  0x4b   :  { %616 = vrcp.f32 %v222_v11  ;;  %v605_v47 = vpop.eup %604  ;;  %v225_v0 = vadd.f32 1.0, %v603_v50  ;;  %v201_v59 = vsel %vm177_vm6, 1.0, %v603_v50  ;;  %v296_v50 = vmul.f32 %v1023_v49, %v56_v10 }
  0x4c   :  { %378 = vadd.xlane.f32.xlu0 %v377_v57  ;;  %429 = vadd.xlane.f32.xlu1 %v428_v20  ;;  %v607_v7 = vpop.eup %606  ;;  %v265_v5 = vmul.f32 %v605_v47, %v193_v24  ;;  %v1101_v20 = vld [vmem:[#allocation4_spill] sm:$0xff] }
  0x4d   :  { %v226_v56 = vadd.f32 1.0, %v607_v7  ;;  %618 = vrcp.f32 %v225_v0  ;;  %v202_v30 = vsel %vm178_vm7, 1.0, %v607_v7 }
  0x4e   :  { %v349_v4 = vmul.f32 %v265_v5, %v265_v5  ;;  %v289_v58 = vmul.f32 %v265_v5, %v841_v25  ;;  %v198_v25 = vsel %vm174_vm5, 1.0, %v601_v31 }
  0x4f   :  { %v609_v9 = vpop.eup %608  ;;  %620 = vrcp.f32 %v226_v56 }
  0x50   :  { %v266_v52 = vmul.f32 %v609_v9, %v194_v14  ;;  %315 = vadd.xlane.f32.xlu1 %v314_v51 }
  0x52   :  { %v350_v18 = vmul.f32 %v266_v52, %v266_v52  ;;  %v290_v19 = vmul.f32 %v266_v52, %v846_v27 }
  0x53   :  { %v611_v1 = vpop.eup %610 }
  0x54   :  { %v380_v43 = vadd.f32 %v350_v18, %v349_v4  ;;  %v320_v3 = vadd.f32 %v290_v19, %v289_v58  ;;  %v267_v60 = vmul.f32 %v611_v1, %v195_v45 }
  0x56   :  { %v613_v38 = vpop.eup %612  ;;  %381 = vadd.xlane.f32.xlu0 %v380_v43  ;;  %321 = vadd.xlane.f32.xlu1 %v320_v3  ;;  %v351_v12 = vmul.f32 %v267_v60, %v267_v60  ;;  %v291_v33 = vmul.f32 %v267_v60, %v1102_v36 }
  0x57   :  { %v615_v15 = vpop.eup %614  ;;  %v268_v32 = vmul.f32 %v613_v38, %v196_v16 }
  0x58   :  { %v617_v63 = vpop.eup %616  ;;  %v269_v40 = vmul.f32 %v615_v15, %v197_v2 }
  0x59   :  { %v352_v27 = vmul.f32 %v268_v32, %v268_v32  ;;  %v270_v54 = vmul.f32 %v617_v63, %v198_v25  ;;  %v292_v11 = vmul.f32 %v268_v32, %v1103_v46 }
  0x5a   :  { %v293_v21 = vmul.f32 %v269_v40, %v891_v61  ;;  %v619_v55 = vpop.eup %618  ;;  %v353_v42 = vmul.f32 %v269_v40, %v269_v40 }
  0x5b   :  { %v383_v39 = vadd.f32 %v352_v27, %v351_v12  ;;  %v294_v41 = vmul.f32 %v270_v54, %v896_v62  ;;  %v273_v37 = vmul.f32 %v619_v55, %v201_v59  ;;  %v354_v53 = vmul.f32 %v270_v54, %v270_v54  ;;  %v55_v62 = vld [vmem:[%s1093_s1 + $0xa0] sm:$0xff] }
  0x5c   :  { %v621_v23 = vpop.eup %620  ;;  %v323_v57 = vadd.f32 %v292_v11, %v291_v33  ;;  %v295_v24 = vmul.f32 %v1019_v6, %v55_v62 }
  0x5d   :  { %384 = vadd.xlane.f32.xlu0 %v383_v39  ;;  %v326_v34 = vadd.f32 %v294_v41, %v293_v21  ;;  %v274_v26 = vmul.f32 %v621_v23, %v202_v30  ;;  %v297_v8 = vmul.f32 %v273_v37, %v1045_v22  ;;  %v386_v61 = vadd.f32 %v354_v53, %v353_v42 }
  0x5e   :  { %v425_v22 = vadd.f32 %v56_v10, %v55_v62  ;;  %v357_v31 = vmul.f32 %v273_v37, %v273_v37 }
  0x5f   :  { %327 = vadd.xlane.f32.xlu1 %v326_v34  ;;  %v298_v48 = vmul.f32 %v274_v26, %v1050_v35  ;;  %v358_v44 = vmul.f32 %v274_v26, %v274_v26 }
  0x61   :  { %300 = vadd.xlane.f32.xlu0 %v1101_v20  ;;  %v332_v28 = vadd.f32 %v298_v48, %v297_v8  ;;  %v392_v35 = vadd.f32 %v358_v44, %v357_v31 }
  0x63   :  { %333 = vadd.xlane.f32.xlu1 %v332_v28 }
  0x65   :  { %387 = vadd.xlane.f32.xlu0 %v386_v61 }
  0x69   :  { %306 = vadd.xlane.f32.xlu0 %v1008_v13  ;;  %v329_v13 = vadd.f32 %v296_v50, %v295_v24 }
  0x6d   :  { %426 = vadd.xlane.f32.xlu0 %v425_v22 }
  0x71   :  { %393 = vadd.xlane.f32.xlu0 %v392_v35 }
  0x75   :  { %312 = vadd.xlane.f32.xlu0 %v1037_v17 }
  0x79   :  { %318 = vadd.xlane.f32.xlu0 %v1062_v29 }
  0x7d   :  { %324 = vadd.xlane.f32.xlu0 %v323_v57 }
  0x81   :  { %330 = vadd.xlane.f32.xlu0 %v329_v13 }
  0x8d   :  { %v397_v47 = vpop.xlane.xlu1 %396 }
  0x91   :  { %v400_v51 = vpop.xlane.xlu1 %399 }
  0x95   :  { %v403_v0 = vpop.xlane.xlu1 %402 }
  0x99   :  { %v406_v7 = vpop.xlane.xlu1 %405 }
  0x9d   :  { %v409_v5 = vpop.xlane.xlu1 %408 }
  0xa1   :  { %v412_v9 = vpop.xlane.xlu1 %411 }
  0xa5   :  { %v415_v4 = vpop.xlane.xlu1 %414 }
  0xa9   :  { %v418_v58 = vpop.xlane.xlu1 %417 }
  0xad   :  { %v421_v6 = vpop.xlane.xlu1 %420 }
  0xb1   :  { %v424_v49 = vpop.xlane.xlu1 %423 }
  0xb7   :  { %v361_v14 = vpop.xlane.xlu0 %360 }
  0xb8   :  { %v443_v1 = vadd.f32 %v397_v47, %v361_v14 }
  0xba   :  { %v455_v2 = vadd.f32 1e-06, %v443_v1 }
  0xbc   :  { %v364_v17 = vpop.xlane.xlu0 %363  ;;  %v304_v3 = vpop.xlane.xlu1 %303 }
  0xbd   :  { %v444_v19 = vadd.f32 %v400_v51, %v364_v17  ;;  %v432_v42 = vmul.f32 2.0, %v304_v3 }
  0xbf   :  { %v456_v60 = vadd.f32 1e-06, %v444_v19 }
  0xc0   :  { %v367_v56 = vpop.xlane.xlu0 %366 }
  0xc1   :  { %v445_v16 = vadd.f32 %v403_v0, %v367_v56  ;;  %622 = vrcp.f32 %v456_v60 }
  0xc2   :  { %624 = vrcp.f32 %v455_v2 }
  0xc3   :  { %v457_v38 = vadd.f32 1e-06, %v445_v16 }
  0xc4   :  { %v370_v52 = vpop.xlane.xlu0 %369 }
  0xc5   :  { %v446_v25 = vadd.f32 %v406_v7, %v370_v52  ;;  %626 = vrcp.f32 %v457_v38 }
  0xc7   :  { %v458_v63 = vadd.f32 1e-06, %v446_v25 }
  0xc8   :  { %v373_v29 = vpop.xlane.xlu0 %372 }
  0xc9   :  { %v447_v27 = vadd.f32 %v409_v5, %v373_v29  ;;  %628 = vrcp.f32 %v458_v63 }
  0xcb   :  { %v459_v39 = vadd.f32 1e-06, %v447_v27 }
  0xcc   :  { %v376_v18 = vpop.xlane.xlu0 %375 }
  0xcd   :  { %v391_v32 = vpop.xlane.xlu1 %390  ;;  %v448_v12 = vadd.f32 %v412_v9, %v376_v18 }
  0xce   :  { %v623_v34 = vpop.eup %622 }
  0xcf   :  { %v460_v54 = vadd.f32 1e-06, %v448_v12  ;;  %v625_v61 = vpop.eup %624  ;;  %v480_v22 = vmul.f32 %v623_v34, %v432_v42 }
  0xd1   :  { %v310_v59 = vpop.xlane.xlu1 %309  ;;  %630 = vrcp.f32 %v460_v54  ;;  %v492_v13 = vsub.f32 1.0, %v480_v22 }
  0xd2   :  { %632 = vrcp.f32 %v459_v39  ;;  %v627_v10 = vpop.eup %626  ;;  %v434_v33 = vmul.f32 2.0, %v310_v59 }
  0xd5   :  { %v379_v45 = vpop.xlane.xlu0 %378  ;;  %v430_v8 = vpop.xlane.xlu1 %429 }
  0xd6   :  { %v449_v30 = vadd.f32 %v415_v4, %v379_v45  ;;  %v629_v57 = vpop.eup %628 }
  0xd7   :  { %v482_v14 = vmul.f32 %v629_v57, %v434_v33 }
  0xd8   :  { %v461_v26 = vadd.f32 1e-06, %v449_v30 }
  0xd9   :  { %v316_v46 = vpop.xlane.xlu1 %315  ;;  %v494_v18 = vsub.f32 1.0, %v482_v14 }
  0xda   :  { %v436_v0 = vmul.f32 2.0, %v316_v46 }
  0xde   :  { %v631_v7 = vpop.eup %630 }
  0xdf   :  { %v382_v43 = vpop.xlane.xlu0 %381  ;;  %v322_v5 = vpop.xlane.xlu1 %321 }
  0xe0   :  { %v450_v21 = vadd.f32 %v418_v58, %v382_v43  ;;  %v633_v29 = vpop.eup %632  ;;  %v484_v58 = vmul.f32 %v631_v7, %v436_v0 }
  0xe2   :  { %v462_v41 = vadd.f32 1e-06, %v450_v21  ;;  %v496_v2 = vsub.f32 1.0, %v484_v58 }
  0xe4   :  { %634 = vrcp.f32 %v462_v41 }
  0xe5   :  { %636 = vrcp.f32 %v461_v26 }
  0xe6   :  { %v385_v15 = vpop.xlane.xlu0 %384 }
  0xe7   :  { %v451_v48 = vadd.f32 %v421_v6, %v385_v15  ;;  %v438_v6 = vmul.f32 2.0, %v322_v5 }
  0xe8   :  { %v328_v45 = vpop.xlane.xlu1 %327 }
  0xe9   :  { %v463_v44 = vadd.f32 1e-06, %v451_v48  ;;  %v440_v25 = vmul.f32 2.0, %v328_v45 }
  0xea   :  { %v301_v40 = vpop.xlane.xlu0 %300 }
  0xeb   :  { %v431_v37 = vmul.f32 2.0, %v301_v40 }
  0xec   :  { %v334_v12 = vpop.xlane.xlu1 %333 }
  0xed   :  { %v479_v28 = vmul.f32 %v625_v61, %v431_v37 }
  0xee   :  { %v388_v55 = vpop.xlane.xlu0 %387 }
  0xef   :  { %v452_v23 = vadd.f32 %v424_v49, %v388_v55  ;;  %v491_v11 = vsub.f32 1.0, %v479_v28  ;;  %v442_v55 = vmul.f32 2.0, %v334_v12 }
  0xf1   :  { %v464_v62 = vadd.f32 1e-06, %v452_v23  ;;  %v503_v17 = vadd.f32 %v492_v13, %v491_v11  ;;  %v635_v19 = vpop.eup %634 }
  0xf2   :  { %v307_v53 = vpop.xlane.xlu0 %306  ;;  %v637_v60 = vpop.eup %636  ;;  %v486_v38 = vmul.f32 %v635_v19, %v438_v6 }
  0xf3   :  { %v433_v20 = vmul.f32 2.0, %v307_v53  ;;  %638 = vrcp.f32 %v464_v62 }
  0xf4   :  { %640 = vrcp.f32 %v463_v44  ;;  %v498_v39 = vsub.f32 1.0, %v486_v38 }
  0xf5   :  { %v481_v35 = vmul.f32 %v627_v10, %v433_v20 }
  0xf6   :  { %v427_v31 = vpop.xlane.xlu0 %426 }
  0xf7   :  { %v453_v36 = vadd.f32 %v427_v31, %v391_v32  ;;  %v493_v47 = vsub.f32 1.0, %v481_v35 }
  0xf9   :  { %v465_v24 = vadd.f32 1e-06, %v453_v36  ;;  %v504_v52 = vadd.f32 %v503_v17, %v493_v47 }
  0xfa   :  { %v394_v50 = vpop.xlane.xlu0 %393 }
  0xfb   :  { %v454_v51 = vadd.f32 %v430_v8, %v394_v50  ;;  %642 = vrcp.f32 %v465_v24  ;;  %v505_v43 = vadd.f32 %v504_v52, %v494_v18 }
  0xfd   :  { %v466_v56 = vadd.f32 1e-06, %v454_v51 }
  0xfe   :  { %v313_v9 = vpop.xlane.xlu0 %312 }
  0xff   :  { %644 = vrcp.f32 %v466_v56  ;;  %v435_v4 = vmul.f32 2.0, %v313_v9 }
 0x100   :  { %v639_v63 = vpop.eup %638 }
 0x101   :  { %v483_v49 = vmul.f32 %v633_v29, %v435_v4  ;;  %v641_v21 = vpop.eup %640  ;;  %v488_v30 = vmul.f32 %v639_v63, %v440_v25 }
 0x102   :  { %v319_v1 = vpop.xlane.xlu0 %318 }
 0x103   :  { %v495_v16 = vsub.f32 1.0, %v483_v49  ;;  %v437_v3 = vmul.f32 2.0, %v319_v1  ;;  %v500_v48 = vsub.f32 1.0, %v488_v30 }
 0x105   :  { %v506_v15 = vadd.f32 %v505_v43, %v495_v16  ;;  %v485_v32 = vmul.f32 %v637_v60, %v437_v3 }
 0x106   :  { %v325_v40 = vpop.xlane.xlu0 %324 }
 0x107   :  { %v507_v27 = vadd.f32 %v506_v15, %v496_v2  ;;  %v497_v54 = vsub.f32 1.0, %v485_v32  ;;  %v439_v59 = vmul.f32 2.0, %v325_v40 }
 0x108   :  { %v643_v42 = vpop.eup %642 }
 0x109   :  { %v508_v41 = vadd.f32 %v507_v27, %v497_v54  ;;  %v487_v37 = vmul.f32 %v641_v21, %v439_v59 }
 0x10a   :  { %v331_v23 = vpop.xlane.xlu0 %330 }
 0x10b   :  { %v509_v53 = vadd.f32 %v508_v41, %v498_v39  ;;  %v499_v34 = vsub.f32 1.0, %v487_v37  ;;  %v441_v26 = vmul.f32 2.0, %v331_v23 }
 0x10c   :  { %v645_v8 = vpop.eup %644 }
 0x10d   :  { %v510_v20 = vadd.f32 %v509_v53, %v499_v34  ;;  %v490_v61 = vmul.f32 %v645_v8, %v442_v55  ;;  %v489_v28 = vmul.f32 %v643_v42, %v441_v26 }
 0x10f   :  { %v511_v62 = vadd.f32 %v510_v20, %v500_v48  ;;  %v501_v10 = vsub.f32 1.0, %v489_v28  ;;  %v502_v22 = vsub.f32 1.0, %v490_v61 }
 0x111   :  { %v512_v31 = vadd.f32 %v511_v62, %v501_v10 }
 0x113   :  { %v513_v44 = vadd.f32 %v512_v31, %v502_v22 }
 0x115   :  { %v514_v35 = vrot.slane %v513_v44, 4 }
 0x117   :  { %v515_v36 = vadd.f32 %v514_v35, %v513_v44 }
 0x119   :  { %v516_v33 = vrot.slane %v515_v36, 2 }
 0x11b   :  { %v517_v46 = vadd.f32 %v516_v33, %v515_v36 }
 0x11d   :  { %v518_v11 = vrot.slane %v517_v46, 1 }
 0x11f   :  { %v519_v57 = vadd.f32 %v518_v11, %v517_v46 }
 0x121   :  { %v520_v24 = vmul.f32 0.010416667, %v519_v57 }
 0x123   :  { %521 = vst [vmem:[%s1095_s2] sm:$0x1] %v520_v24 }

</bundles_post_ra>
